<compile_context>
chip_gen: v7x
topology: tpu7x:2x2x1
jax: 0.10.0
libtpu: 0.0.40
codegen_flags: <defaults>
</compile_context>

<pallas_src>
import math

import jax
import jax.numpy as jnp
import numpy as np
from jax import lax
from jax.experimental import pallas as pl
from jax.experimental.pallas import tpu as pltpu


# -----------------------------------------------------------------------------
# Hyper-parameters (small shapes consistent with the module)
# -----------------------------------------------------------------------------
MAXLEN        = 8      # "maxlen" global used by the PyTorch module
INPUT_SIZE    = 4
HIDDEN_DIM    = 32
NUM_LAYERS    = 2
OUTPUT_SIZE   = 16
BIDIRECTIONAL = True   # fc sizing (hidden_dim*maxlen/2) only works out bidirectional
BATCH         = 2
NUM_DIRS      = 2 if BIDIRECTIONAL else 1

# Projection-slab row offsets (8-row aligned so all in-kernel slab loads are
# sublane-aligned).
_G         = 4 * HIDDEN_DIM            # gate block per direction (=128 lanes)
_ROW_WIH0  = 0                         # (I, 8H)
_ROW_B0    = 8                         # (1, 8H)
_ROW_WIH1  = 16                        # (2H, 8H)
_ROW_B1    = _ROW_WIH1 + 2 * HIDDEN_DIM  # (1, 8H)
_PROJ_ROWS = _ROW_B1 + 8


# -----------------------------------------------------------------------------
# Fused kernel
#   x_ref    : (B*T, I)        batch-major input rows (row = b*T + t, free reshape)
#   proj_ref : (88, 8H)  f32   [wih0 | pad | b0 | pad | wih1 | b1 | pad]
#   rec_ref  : (2H, 8H)  bf16  [whh0_cat ; whh1_cat]   (each (H, 8H) = [fwd|bwd])
#   head_ref : (T*H+1, 2*O) f32  folded pool+flatten+fc+fc2 weight, last row bias
#   out_ref  : (B, O)
#   scratch  : packed per-step gate pre-activations (x2), layer-1 input, head input
# Gate order inside each 4H block is PyTorch's (i, f, g, o).
# -----------------------------------------------------------------------------
def _srnn_fused_kernel(x_ref, proj_ref, rec_ref, head_ref, out_ref,
                       pp0_ref, pp1_ref, y1_ref, hc_ref):
    f32, bf16 = jnp.float32, jnp.bfloat16
    B, O2 = out_ref.shape
    I = x_ref.shape[1]
    T = x_ref.shape[0] // B
    H = rec_ref.shape[0] // 2
    G = 4 * H                      # per-direction gate width
    B2 = 2 * B                     # fwd+bwd packed along sublanes

    # Hoisted masks shared by both layers (rows 0:B = forward direction).
    fwd_rows = lax.broadcasted_iota(jnp.int32, (B2, G), 0) < B
    lane = lax.broadcasted_iota(jnp.int32, (B2, G), 1)
    g_lanes = (lane >= 2 * H) & (lane < 3 * H)

    def cell(gates, c_prev):
        # One EUP pass over the packed (2B, 4H) gates:
        #   sigmoid(x) = 0.5 * tanh(x / 2) + 0.5
        scaled = jnp.where(g_lanes, gates, 0.5 * gates)
        t = jnp.tanh(scaled)
        act = jnp.where(g_lanes, t, 0.5 * t + 0.5)
        i_g = act[:, 0:H]
        f_g = act[:, H:2 * H]
        g_g = act[:, 2 * H:3 * H]
        o_g = act[:, 3 * H:4 * H]
        c_new = f_g * c_prev + i_g * g_g
        h_new = o_g * jnp.tanh(c_new)
        return h_new, c_new

    def recurrence(pp_ref, whh_bf16):
        # Packed recurrence: rows 0:B = fwd (time s), rows B:2B = bwd (time T-1-s).
        h = jnp.zeros((B2, H), f32)
        c = jnp.zeros((B2, H), f32)
        hs = []
        for s in range(T):                       # static trip count -> unrolled
            # One bf16 MXU push per step covering BOTH directions.
            rmat = jnp.dot(h.astype(bf16), whh_bf16,
                           preferred_element_type=f32)            # (2B, 8H)
            rec = jnp.where(fwd_rows, rmat[:, 0:G], rmat[:, G:2 * G])
            gates = pp_ref[s * B2:(s + 1) * B2, :] + rec
            h, c = cell(gates, c)
            hs.append(h)                          # stays in vregs, no store here
        return hs

    # ----- static parameter slab slices -----
    wih0 = proj_ref[_ROW_WIH0:_ROW_WIH0 + I, :]           # (I,  8H) f32
    b0   = proj_ref[_ROW_B0:_ROW_B0 + 1, :]               # (1,  8H)
    wih1 = proj_ref[_ROW_WIH1:_ROW_WIH1 + 2 * H, :]       # (2H, 8H)
    b1   = proj_ref[_ROW_B1:_ROW_B1 + 1, :]               # (1,  8H)
    whh0 = rec_ref[0:H, :]                                 # (H, 8H) bf16
    whh1 = rec_ref[H:2 * H, :]

    # ------------------- layer 0 -------------------
    # Hoisted input projection: one matmul, all timesteps, both directions.
    pre0 = jnp.dot(x_ref[...], wih0, preferred_element_type=f32) + b0   # (B*T, 8H)
    # Pack per-step (2B, G) blocks: rows 0:B = fwd pre @ time s,
    # rows B:2B = bwd pre @ time T-1-s.  (Off the critical recurrence chain.)
    for s in range(T):
        tb = T - 1 - s
        for b in range(B):
            rf, rb = b * T + s, b * T + tb
            pp0_ref[s * B2 + b:s * B2 + b + 1, :] = pre0[rf:rf + 1, 0:G]
            pp0_ref[s * B2 + B + b:s * B2 + B + b + 1, :] = pre0[rb:rb + 1, G:2 * G]

    hs0 = recurrence(pp0_ref, whh0)
    # TODO(synk): nn.LSTM inter-layer dropout is train-mode-only (stochastic);
    #             eval-mode forward is identity, so it is omitted here.

    # ------------------- layer 1 -------------------
    # Assemble the time-major layer-1 input from registers, outside the loop.
    for t in range(T):
        y1_ref[t * B:(t + 1) * B, 0:H] = hs0[t][0:B, :]                  # h_f^(t)
        y1_ref[t * B:(t + 1) * B, H:2 * H] = hs0[T - 1 - t][B:2 * B, :]  # h_b^(t)
    pre1 = jnp.dot(y1_ref[...], wih1, preferred_element_type=f32) + b1   # (T*B, 8H)
    for s in range(T):
        tb = T - 1 - s
        pp1_ref[s * B2:s * B2 + B, :] = pre1[s * B:(s + 1) * B, 0:G]
        pp1_ref[s * B2 + B:(s + 1) * B2, :] = pre1[tb * B:(tb + 1) * B, G:2 * G]

    hs1 = recurrence(pp1_ref, whh1)

    # ------------------- head -------------------
    # AvgPool2d(2)+flatten+fc+fc2 folded offline into one (T*H, 2*O) weight;
    # a single hoisted matmul replaces 16 tiny per-step ones.
    for s in range(T):
        hc_ref[:, s * H:(s + 1) * H] = hs1[s]
    r2 = jnp.dot(hc_ref[...], head_ref[0:T * H, :],
                 preferred_element_type=f32)                      # (2B, 2*O)
    out_ref[...] = (r2[0:B, 0:O2] + r2[B:2 * B, O2:2 * O2]
                    + head_ref[T * H:T * H + 1, 0:O2])


# -----------------------------------------------------------------------------
# Deterministic raw parameter init (PyTorch default layouts / uniform init)
# -----------------------------------------------------------------------------
def init_params(key):
    def unif(k, shape, bound):
        return jax.random.uniform(k, shape, jnp.float32, -bound, bound)

    raw = {"lstm": []}
    k_h = 1.0 / math.sqrt(HIDDEN_DIM)
    for layer in range(NUM_LAYERS):
        in_feat = INPUT_SIZE if layer == 0 else HIDDEN_DIM * NUM_DIRS
        dirs = []
        for _d in range(NUM_DIRS):
            key, k1, k2, k3, k4 = jax.random.split(key, 5)
            dirs.append({
                "wih": unif(k1, (4 * HIDDEN_DIM, in_feat), k_h),
                "whh": unif(k2, (4 * HIDDEN_DIM, HIDDEN_DIM), k_h),
                "bih": unif(k3, (4 * HIDDEN_DIM,), k_h),
                "bhh": unif(k4, (4 * HIDDEN_DIM,), k_h),
            })
        raw["lstm"].append(dirs)

    fc_in = int(HIDDEN_DIM * MAXLEN * 1 / 2)     # same expression as the module
    F = HIDDEN_DIM * NUM_DIRS
    Th, Fh = MAXLEN // 2, F // 2
    assert fc_in == Th * Fh

    key, k1, k2, k3, k4 = jax.random.split(key, 5)
    k_fc = 1.0 / math.sqrt(fc_in)
    raw["fc_w"] = unif(k1, (OUTPUT_SIZE, fc_in), k_fc)
    raw["fc_b"] = unif(k2, (OUTPUT_SIZE,), k_fc)
    k_fc2 = 1.0 / math.sqrt(OUTPUT_SIZE)
    raw["fc2_w"] = unif(k3, (OUTPUT_SIZE, OUTPUT_SIZE), k_fc2)
    raw["fc2_b"] = unif(k4, (OUTPUT_SIZE,), k_fc2)
    return raw


# -----------------------------------------------------------------------------
# Offline refolding / slab packing of the PyTorch-layout weights
# -----------------------------------------------------------------------------
def prepare_kernel_params(raw):
    f32 = jnp.float32
    H, T, O = HIDDEN_DIM, MAXLEN, OUTPUT_SIZE
    l0, l1 = raw["lstm"][0], raw["lstm"][1]

    def cat_wih(dirs):
        return jnp.concatenate([d["wih"].T for d in dirs], axis=1)          # (in, 8H)

    def cat_b(dirs):
        return jnp.concatenate([d["bih"] + d["bhh"] for d in dirs])[None, :]  # (1, 8H)

    def pad_rows(a, rows):
        return jnp.concatenate(
            [a, jnp.zeros((rows - a.shape[0], a.shape[1]), f32)], axis=0)

    # f32 slab: hoisted projection weights + fused biases (8-row aligned).
    proj = jnp.concatenate([
        pad_rows(cat_wih(l0), _ROW_B0 - _ROW_WIH0),     # rows  0:8   wih0 (I rows)
        pad_rows(cat_b(l0),   _ROW_WIH1 - _ROW_B0),     # rows  8:16  b0
        cat_wih(l1),                                    # rows 16:80  wih1 (2H rows)
        pad_rows(cat_b(l1),   _PROJ_ROWS - _ROW_B1),    # rows 80:88  b1
    ], axis=0).astype(f32)
    assert proj.shape == (_PROJ_ROWS, 2 * _G)

    # bf16 slab: recurrent weights (critical serial-path MXU operands).
    rec = jnp.concatenate([
        jnp.concatenate([d["whh"].T for d in l0], axis=1),   # (H, 8H)
        jnp.concatenate([d["whh"].T for d in l1], axis=1),
    ], axis=0).astype(jnp.bfloat16)                           # (2H, 8H)

    # Fold AvgPool2d(2) + flatten + fc + fc2 into one (T*H, 2*O) weight.
    F = H * NUM_DIRS
    Th, Fh = T // 2, F // 2
    w3 = raw["fc_w"].reshape(O, Th, Fh).transpose(1, 2, 0)            # (Th, Fh, O)
    wfold = 0.25 * jnp.repeat(jnp.repeat(w3, 2, axis=0), 2, axis=1)   # (T,  F,  O)
    fc2_t = raw["fc2_w"].T                                            # (O, O)
    wf = wfold[:, :H, :].reshape(T * H, O) @ fc2_t       # fwd: row-block s -> time s
    wb = wfold[::-1, H:, :].reshape(T * H, O) @ fc2_t    # bwd: row-block s -> time T-1-s
    bias = (raw["fc_b"] @ fc2_t + raw["fc2_b"])[None, :]              # (1, O)
    head = jnp.concatenate([
        jnp.concatenate([wf, wb], axis=1),                            # (T*H, 2O)
        jnp.concatenate([bias, jnp.zeros((1, O), f32)], axis=1),      # (1,   2O)
    ], axis=0).astype(f32)

    return {"proj": proj, "rec": rec, "head": head}


# -----------------------------------------------------------------------------
# Forward pass: a single fused pallas_call (everything VMEM resident, no grid)
# -----------------------------------------------------------------------------
@jax.jit
def srnn_forward(kp, x):
    B, T, I = x.shape
    x_flat = x.astype(jnp.float32).reshape(B * T, I)   # free reshape, no transpose

    vmem = pl.BlockSpec(memory_space=pltpu.MemorySpace.VMEM)
    return pl.pallas_call(
        _srnn_fused_kernel,
        out_shape=jax.ShapeDtypeStruct((B, OUTPUT_SIZE), jnp.float32),
        in_specs=[vmem] * 4,
        out_specs=vmem,
        scratch_shapes=[
            pltpu.VMEM((T * 2 * B, _G), jnp.float32),               # packed layer-0 pre
            pltpu.VMEM((T * 2 * B, _G), jnp.float32),               # packed layer-1 pre
            pltpu.VMEM((T * B, 2 * HIDDEN_DIM), jnp.float32),       # layer-1 input
            pltpu.VMEM((2 * B, T * HIDDEN_DIM), jnp.float32),       # head input
        ],
    )(x_flat, kp["proj"], kp["rec"], kp["head"])


# -----------------------------------------------------------------------------
# Pure-JAX reference (mirrors the PyTorch module exactly)
# -----------------------------------------------------------------------------
def ref_forward(raw, x):
    hp = lax.Precision.HIGHEST
    H = HIDDEN_DIM
    h = x.astype(jnp.float32)
    for layer in range(NUM_LAYERS):
        x_tbf = jnp.transpose(h, (1, 0, 2))
        outs = []
        for d in range(NUM_DIRS):
            p = raw["lstm"][layer][d]
            wih_t, whh_t = p["wih"].T, p["whh"].T
            b = (p["bih"] + p["bhh"])[None, :]
            xin = x_tbf if d == 0 else jnp.flip(x_tbf, axis=0)
            B = xin.shape[1]

            def step(carry, x_t, wih_t=wih_t, whh_t=whh_t, b=b):
                hh, cc = carry
                gates = (jnp.dot(x_t, wih_t, precision=hp)
                         + jnp.dot(hh, whh_t, precision=hp) + b)
                i = jax.nn.sigmoid(gates[:, :H])
                f = jax.nn.sigmoid(gates[:, H:2 * H])
                g = jnp.tanh(gates[:, 2 * H:3 * H])
                o = jax.nn.sigmoid(gates[:, 3 * H:])
                cc = f * cc + i * g
                hh = o * jnp.tanh(cc)
                return (hh, cc), hh

            init = (jnp.zeros((B, H), jnp.float32), jnp.zeros((B, H), jnp.float32))
            _, o_seq = lax.scan(step, init, xin)       # (T, B, H)
            if d == 1:
                o_seq = jnp.flip(o_seq, axis=0)
            outs.append(jnp.transpose(o_seq, (1, 0, 2)))
        h = jnp.concatenate(outs, axis=-1)
    B, T, F = h.shape
    pooled = h.reshape(B, T // 2, 2, F // 2, 2).mean(axis=(2, 4))   # AvgPool2d(2)
    flat = pooled.reshape(B, -1)
    fc1 = jnp.dot(flat, raw["fc_w"].T, precision=hp) + raw["fc_b"]
    return jnp.dot(fc1, raw["fc2_w"].T, precision=hp) + raw["fc2_b"]


if __name__ == "__main__":
    key = jax.random.PRNGKey(0)
    key, pkey, xkey = jax.random.split(key, 3)
    raw = init_params(pkey)
    kparams = prepare_kernel_params(raw)
    x = jax.random.normal(xkey, (BATCH, MAXLEN, INPUT_SIZE), jnp.float32)

    out = jax.block_until_ready(srnn_forward(kparams, x))
    assert out.shape == (BATCH, OUTPUT_SIZE), out.shape

    ref = jax.block_until_ready(ref_forward(raw, x))
    np.testing.assert_allclose(np.asarray(out), np.asarray(ref), rtol=2e-2, atol=5e-3)

    print("KERNEL_OK")
</pallas_src>

<mosaic_0001>
module attributes {stable_mosaic.version = 11 : i64} {
  func.func @_srnn_fused_kernel(%arg0: memref<16x4xf32, #tpu.memory_space<vmem>>, %arg1: memref<88x256xf32, #tpu.memory_space<vmem>>, %arg2: memref<64x256xbf16, #tpu.memory_space<vmem>>, %arg3: memref<257x32xf32, #tpu.memory_space<vmem>>, %arg4: memref<2x16xf32, #tpu.memory_space<vmem>>, %arg5: memref<32x128xf32, #tpu.memory_space<vmem>>, %arg6: memref<32x128xf32, #tpu.memory_space<vmem>>, %arg7: memref<16x64xf32, #tpu.memory_space<vmem>>, %arg8: memref<4x256xf32, #tpu.memory_space<vmem>>) attributes {dimension_semantics = [], scalar_prefetch = 0 : i64, scratch_operands = 4 : i64, tpu.core_type = #tpu.core_type<tc>} {
    %0 = tpu.iota {dimensions = array<i32: 0>} : vector<4x128xi32>
    %c2_i32 = arith.constant 2 : i32
    %1 = vector.broadcast %c2_i32 : i32 to vector<4x128xi32>
    %2 = arith.cmpi slt, %0, %1 : vector<4x128xi32>
    %3 = tpu.iota {dimensions = array<i32: 1>} : vector<4x128xi32>
    %c64_i32 = arith.constant 64 : i32
    %4 = vector.broadcast %c64_i32 : i32 to vector<4x128xi32>
    %5 = arith.cmpi sge, %3, %4 : vector<4x128xi32>
    %c96_i32 = arith.constant 96 : i32
    %6 = vector.broadcast %c96_i32 : i32 to vector<4x128xi32>
    %7 = arith.cmpi slt, %3, %6 : vector<4x128xi32>
    %8 = arith.andi %5, %7 : vector<4x128xi1>
    %c0 = arith.constant 0 : index
    %c0_0 = arith.constant 0 : index
    %9 = vector.load %arg1[%c0, %c0_0] : memref<88x256xf32, #tpu.memory_space<vmem>>, vector<4x256xf32>
    %c8 = arith.constant 8 : index
    %c0_1 = arith.constant 0 : index
    %10 = vector.load %arg1[%c8, %c0_1] : memref<88x256xf32, #tpu.memory_space<vmem>>, vector<1x256xf32>
    %c16 = arith.constant 16 : index
    %c0_2 = arith.constant 0 : index
    %11 = vector.load %arg1[%c16, %c0_2] : memref<88x256xf32, #tpu.memory_space<vmem>>, vector<64x256xf32>
    %c80 = arith.constant 80 : index
    %c0_3 = arith.constant 0 : index
    %12 = vector.load %arg1[%c80, %c0_3] : memref<88x256xf32, #tpu.memory_space<vmem>>, vector<1x256xf32>
    %c0_4 = arith.constant 0 : index
    %c0_5 = arith.constant 0 : index
    %13 = vector.load %arg2[%c0_4, %c0_5] : memref<64x256xbf16, #tpu.memory_space<vmem>>, vector<32x256xbf16>
    %c32 = arith.constant 32 : index
    %c0_6 = arith.constant 0 : index
    %14 = vector.load %arg2[%c32, %c0_6] : memref<64x256xbf16, #tpu.memory_space<vmem>>, vector<32x256xbf16>
    %c0_7 = arith.constant 0 : index
    %c0_8 = arith.constant 0 : index
    %15 = vector.load %arg0[%c0_7, %c0_8] : memref<16x4xf32, #tpu.memory_space<vmem>>, vector<16x4xf32>
    %cst = arith.constant dense<0.000000e+00> : vector<16x256xf32>
    %16 = tpu.matmul %15, %9, %cst {dimension_numbers = #tpu.dot_dimension_numbers<[1], [0], [0], [1], [0, 0, 1, 1], [], []>} : vector<16x4xf32>, vector<4x256xf32>, vector<16x256xf32> -> vector<16x256xf32>
    %17 = vector.broadcast %10 : vector<1x256xf32> to vector<16x256xf32>
    %18 = arith.addf %16, %17 : vector<16x256xf32>
    %19 = vector.extract_strided_slice %18 {offsets = [0, 0], sizes = [1, 128], strides = [1, 1]} : vector<16x256xf32> to vector<1x128xf32>
    %c0_9 = arith.constant 0 : index
    %c0_10 = arith.constant 0 : index
    %20 = vector.load %arg5[%c0_9, %c0_10] : memref<32x128xf32, #tpu.memory_space<vmem>>, vector<1x128xf32>
    tpu.vector_store %arg5[%c0_9, %c0_10], %19 {strides = array<i32>} : memref<32x128xf32, #tpu.memory_space<vmem>>, vector<1x128xf32>,
    %21 = vector.extract_strided_slice %18 {offsets = [7, 128], sizes = [1, 128], strides = [1, 1]} : vector<16x256xf32> to vector<1x128xf32>
    %c2 = arith.constant 2 : index
    %c0_11 = arith.constant 0 : index
    %22 = vector.load %arg5[%c2, %c0_11] : memref<32x128xf32, #tpu.memory_space<vmem>>, vector<1x128xf32>
    tpu.vector_store %arg5[%c2, %c0_11], %21 {strides = array<i32>} : memref<32x128xf32, #tpu.memory_space<vmem>>, vector<1x128xf32>,
    %23 = vector.extract_strided_slice %18 {offsets = [8, 0], sizes = [1, 128], strides = [1, 1]} : vector<16x256xf32> to vector<1x128xf32>
    %c1 = arith.constant 1 : index
    %c0_12 = arith.constant 0 : index
    %24 = vector.load %arg5[%c1, %c0_12] : memref<32x128xf32, #tpu.memory_space<vmem>>, vector<1x128xf32>
    tpu.vector_store %arg5[%c1, %c0_12], %23 {strides = array<i32>} : memref<32x128xf32, #tpu.memory_space<vmem>>, vector<1x128xf32>,
    %25 = vector.extract_strided_slice %18 {offsets = [15, 128], sizes = [1, 128], strides = [1, 1]} : vector<16x256xf32> to vector<1x128xf32>
    %c3 = arith.constant 3 : index
    %c0_13 = arith.constant 0 : index
    %26 = vector.load %arg5[%c3, %c0_13] : memref<32x128xf32, #tpu.memory_space<vmem>>, vector<1x128xf32>
    tpu.vector_store %arg5[%c3, %c0_13], %25 {strides = array<i32>} : memref<32x128xf32, #tpu.memory_space<vmem>>, vector<1x128xf32>,
    %27 = vector.extract_strided_slice %18 {offsets = [1, 0], sizes = [1, 128], strides = [1, 1]} : vector<16x256xf32> to vector<1x128xf32>
    %c4 = arith.constant 4 : index
    %c0_14 = arith.constant 0 : index
    %28 = vector.load %arg5[%c4, %c0_14] : memref<32x128xf32, #tpu.memory_space<vmem>>, vector<1x128xf32>
    tpu.vector_store %arg5[%c4, %c0_14], %27 {strides = array<i32>} : memref<32x128xf32, #tpu.memory_space<vmem>>, vector<1x128xf32>,
    %29 = vector.extract_strided_slice %18 {offsets = [6, 128], sizes = [1, 128], strides = [1, 1]} : vector<16x256xf32> to vector<1x128xf32>
    %c6 = arith.constant 6 : index
    %c0_15 = arith.constant 0 : index
    %30 = vector.load %arg5[%c6, %c0_15] : memref<32x128xf32, #tpu.memory_space<vmem>>, vector<1x128xf32>
    tpu.vector_store %arg5[%c6, %c0_15], %29 {strides = array<i32>} : memref<32x128xf32, #tpu.memory_space<vmem>>, vector<1x128xf32>,
    %31 = vector.extract_strided_slice %18 {offsets = [9, 0], sizes = [1, 128], strides = [1, 1]} : vector<16x256xf32> to vector<1x128xf32>
    %c5 = arith.constant 5 : index
    %c0_16 = arith.constant 0 : index
    %32 = vector.load %arg5[%c5, %c0_16] : memref<32x128xf32, #tpu.memory_space<vmem>>, vector<1x128xf32>
    tpu.vector_store %arg5[%c5, %c0_16], %31 {strides = array<i32>} : memref<32x128xf32, #tpu.memory_space<vmem>>, vector<1x128xf32>,
    %33 = vector.extract_strided_slice %18 {offsets = [14, 128], sizes = [1, 128], strides = [1, 1]} : vector<16x256xf32> to vector<1x128xf32>
    %c7 = arith.constant 7 : index
    %c0_17 = arith.constant 0 : index
    %34 = vector.load %arg5[%c7, %c0_17] : memref<32x128xf32, #tpu.memory_space<vmem>>, vector<1x128xf32>
    tpu.vector_store %arg5[%c7, %c0_17], %33 {strides = array<i32>} : memref<32x128xf32, #tpu.memory_space<vmem>>, vector<1x128xf32>,
    %35 = vector.extract_strided_slice %18 {offsets = [2, 0], sizes = [1, 128], strides = [1, 1]} : vector<16x256xf32> to vector<1x128xf32>
    %c8_18 = arith.constant 8 : index
    %c0_19 = arith.constant 0 : index
    %36 = vector.load %arg5[%c8_18, %c0_19] : memref<32x128xf32, #tpu.memory_space<vmem>>, vector<1x128xf32>
    tpu.vector_store %arg5[%c8_18, %c0_19], %35 {strides = array<i32>} : memref<32x128xf32, #tpu.memory_space<vmem>>, vector<1x128xf32>,
    %37 = vector.extract_strided_slice %18 {offsets = [5, 128], sizes = [1, 128], strides = [1, 1]} : vector<16x256xf32> to vector<1x128xf32>
    %c10 = arith.constant 10 : index
    %c0_20 = arith.constant 0 : index
    %38 = vector.load %arg5[%c10, %c0_20] : memref<32x128xf32, #tpu.memory_space<vmem>>, vector<1x128xf32>
    tpu.vector_store %arg5[%c10, %c0_20], %37 {strides = array<i32>} : memref<32x128xf32, #tpu.memory_space<vmem>>, vector<1x128xf32>,
    %39 = vector.extract_strided_slice %18 {offsets = [10, 0], sizes = [1, 128], strides = [1, 1]} : vector<16x256xf32> to vector<1x128xf32>
    %c9 = arith.constant 9 : index
    %c0_21 = arith.constant 0 : index
    %40 = vector.load %arg5[%c9, %c0_21] : memref<32x128xf32, #tpu.memory_space<vmem>>, vector<1x128xf32>
    tpu.vector_store %arg5[%c9, %c0_21], %39 {strides = array<i32>} : memref<32x128xf32, #tpu.memory_space<vmem>>, vector<1x128xf32>,
    %41 = vector.extract_strided_slice %18 {offsets = [13, 128], sizes = [1, 128], strides = [1, 1]} : vector<16x256xf32> to vector<1x128xf32>
    %c11 = arith.constant 11 : index
    %c0_22 = arith.constant 0 : index
    %42 = vector.load %arg5[%c11, %c0_22] : memref<32x128xf32, #tpu.memory_space<vmem>>, vector<1x128xf32>
    tpu.vector_store %arg5[%c11, %c0_22], %41 {strides = array<i32>} : memref<32x128xf32, #tpu.memory_space<vmem>>, vector<1x128xf32>,
    %43 = vector.extract_strided_slice %18 {offsets = [3, 0], sizes = [1, 128], strides = [1, 1]} : vector<16x256xf32> to vector<1x128xf32>
    %c12 = arith.constant 12 : index
    %c0_23 = arith.constant 0 : index
    %44 = vector.load %arg5[%c12, %c0_23] : memref<32x128xf32, #tpu.memory_space<vmem>>, vector<1x128xf32>
    tpu.vector_store %arg5[%c12, %c0_23], %43 {strides = array<i32>} : memref<32x128xf32, #tpu.memory_space<vmem>>, vector<1x128xf32>,
    %45 = vector.extract_strided_slice %18 {offsets = [4, 128], sizes = [1, 128], strides = [1, 1]} : vector<16x256xf32> to vector<1x128xf32>
    %c14 = arith.constant 14 : index
    %c0_24 = arith.constant 0 : index
    %46 = vector.load %arg5[%c14, %c0_24] : memref<32x128xf32, #tpu.memory_space<vmem>>, vector<1x128xf32>
    tpu.vector_store %arg5[%c14, %c0_24], %45 {strides = array<i32>} : memref<32x128xf32, #tpu.memory_space<vmem>>, vector<1x128xf32>,
    %47 = vector.extract_strided_slice %18 {offsets = [11, 0], sizes = [1, 128], strides = [1, 1]} : vector<16x256xf32> to vector<1x128xf32>
    %c13 = arith.constant 13 : index
    %c0_25 = arith.constant 0 : index
    %48 = vector.load %arg5[%c13, %c0_25] : memref<32x128xf32, #tpu.memory_space<vmem>>, vector<1x128xf32>
    tpu.vector_store %arg5[%c13, %c0_25], %47 {strides = array<i32>} : memref<32x128xf32, #tpu.memory_space<vmem>>, vector<1x128xf32>,
    %49 = vector.extract_strided_slice %18 {offsets = [12, 128], sizes = [1, 128], strides = [1, 1]} : vector<16x256xf32> to vector<1x128xf32>
    %c15 = arith.constant 15 : index
    %c0_26 = arith.constant 0 : index
    %50 = vector.load %arg5[%c15, %c0_26] : memref<32x128xf32, #tpu.memory_space<vmem>>, vector<1x128xf32>
    tpu.vector_store %arg5[%c15, %c0_26], %49 {strides = array<i32>} : memref<32x128xf32, #tpu.memory_space<vmem>>, vector<1x128xf32>,
    %51 = vector.extract_strided_slice %18 {offsets = [4, 0], sizes = [1, 128], strides = [1, 1]} : vector<16x256xf32> to vector<1x128xf32>
    %c16_27 = arith.constant 16 : index
    %c0_28 = arith.constant 0 : index
    %52 = vector.load %arg5[%c16_27, %c0_28] : memref<32x128xf32, #tpu.memory_space<vmem>>, vector<1x128xf32>
    tpu.vector_store %arg5[%c16_27, %c0_28], %51 {strides = array<i32>} : memref<32x128xf32, #tpu.memory_space<vmem>>, vector<1x128xf32>,
    %53 = vector.extract_strided_slice %18 {offsets = [3, 128], sizes = [1, 128], strides = [1, 1]} : vector<16x256xf32> to vector<1x128xf32>
    %c18 = arith.constant 18 : index
    %c0_29 = arith.constant 0 : index
    %54 = vector.load %arg5[%c18, %c0_29] : memref<32x128xf32, #tpu.memory_space<vmem>>, vector<1x128xf32>
    tpu.vector_store %arg5[%c18, %c0_29], %53 {strides = array<i32>} : memref<32x128xf32, #tpu.memory_space<vmem>>, vector<1x128xf32>,
    %55 = vector.extract_strided_slice %18 {offsets = [12, 0], sizes = [1, 128], strides = [1, 1]} : vector<16x256xf32> to vector<1x128xf32>
    %c17 = arith.constant 17 : index
    %c0_30 = arith.constant 0 : index
    %56 = vector.load %arg5[%c17, %c0_30] : memref<32x128xf32, #tpu.memory_space<vmem>>, vector<1x128xf32>
    tpu.vector_store %arg5[%c17, %c0_30], %55 {strides = array<i32>} : memref<32x128xf32, #tpu.memory_space<vmem>>, vector<1x128xf32>,
    %57 = vector.extract_strided_slice %18 {offsets = [11, 128], sizes = [1, 128], strides = [1, 1]} : vector<16x256xf32> to vector<1x128xf32>
    %c19 = arith.constant 19 : index
    %c0_31 = arith.constant 0 : index
    %58 = vector.load %arg5[%c19, %c0_31] : memref<32x128xf32, #tpu.memory_space<vmem>>, vector<1x128xf32>
    tpu.vector_store %arg5[%c19, %c0_31], %57 {strides = array<i32>} : memref<32x128xf32, #tpu.memory_space<vmem>>, vector<1x128xf32>,
    %59 = vector.extract_strided_slice %18 {offsets = [5, 0], sizes = [1, 128], strides = [1, 1]} : vector<16x256xf32> to vector<1x128xf32>
    %c20 = arith.constant 20 : index
    %c0_32 = arith.constant 0 : index
    %60 = vector.load %arg5[%c20, %c0_32] : memref<32x128xf32, #tpu.memory_space<vmem>>, vector<1x128xf32>
    tpu.vector_store %arg5[%c20, %c0_32], %59 {strides = array<i32>} : memref<32x128xf32, #tpu.memory_space<vmem>>, vector<1x128xf32>,
    %61 = vector.extract_strided_slice %18 {offsets = [2, 128], sizes = [1, 128], strides = [1, 1]} : vector<16x256xf32> to vector<1x128xf32>
    %c22 = arith.constant 22 : index
    %c0_33 = arith.constant 0 : index
    %62 = vector.load %arg5[%c22, %c0_33] : memref<32x128xf32, #tpu.memory_space<vmem>>, vector<1x128xf32>
    tpu.vector_store %arg5[%c22, %c0_33], %61 {strides = array<i32>} : memref<32x128xf32, #tpu.memory_space<vmem>>, vector<1x128xf32>,
    %63 = vector.extract_strided_slice %18 {offsets = [13, 0], sizes = [1, 128], strides = [1, 1]} : vector<16x256xf32> to vector<1x128xf32>
    %c21 = arith.constant 21 : index
    %c0_34 = arith.constant 0 : index
    %64 = vector.load %arg5[%c21, %c0_34] : memref<32x128xf32, #tpu.memory_space<vmem>>, vector<1x128xf32>
    tpu.vector_store %arg5[%c21, %c0_34], %63 {strides = array<i32>} : memref<32x128xf32, #tpu.memory_space<vmem>>, vector<1x128xf32>,
    %65 = vector.extract_strided_slice %18 {offsets = [10, 128], sizes = [1, 128], strides = [1, 1]} : vector<16x256xf32> to vector<1x128xf32>
    %c23 = arith.constant 23 : index
    %c0_35 = arith.constant 0 : index
    %66 = vector.load %arg5[%c23, %c0_35] : memref<32x128xf32, #tpu.memory_space<vmem>>, vector<1x128xf32>
    tpu.vector_store %arg5[%c23, %c0_35], %65 {strides = array<i32>} : memref<32x128xf32, #tpu.memory_space<vmem>>, vector<1x128xf32>,
    %67 = vector.extract_strided_slice %18 {offsets = [6, 0], sizes = [1, 128], strides = [1, 1]} : vector<16x256xf32> to vector<1x128xf32>
    %c24 = arith.constant 24 : index
    %c0_36 = arith.constant 0 : index
    %68 = vector.load %arg5[%c24, %c0_36] : memref<32x128xf32, #tpu.memory_space<vmem>>, vector<1x128xf32>
    tpu.vector_store %arg5[%c24, %c0_36], %67 {strides = array<i32>} : memref<32x128xf32, #tpu.memory_space<vmem>>, vector<1x128xf32>,
    %69 = vector.extract_strided_slice %18 {offsets = [1, 128], sizes = [1, 128], strides = [1, 1]} : vector<16x256xf32> to vector<1x128xf32>
    %c26 = arith.constant 26 : index
    %c0_37 = arith.constant 0 : index
    %70 = vector.load %arg5[%c26, %c0_37] : memref<32x128xf32, #tpu.memory_space<vmem>>, vector<1x128xf32>
    tpu.vector_store %arg5[%c26, %c0_37], %69 {strides = array<i32>} : memref<32x128xf32, #tpu.memory_space<vmem>>, vector<1x128xf32>,
    %71 = vector.extract_strided_slice %18 {offsets = [14, 0], sizes = [1, 128], strides = [1, 1]} : vector<16x256xf32> to vector<1x128xf32>
    %c25 = arith.constant 25 : index
    %c0_38 = arith.constant 0 : index
    %72 = vector.load %arg5[%c25, %c0_38] : memref<32x128xf32, #tpu.memory_space<vmem>>, vector<1x128xf32>
    tpu.vector_store %arg5[%c25, %c0_38], %71 {strides = array<i32>} : memref<32x128xf32, #tpu.memory_space<vmem>>, vector<1x128xf32>,
    %73 = vector.extract_strided_slice %18 {offsets = [9, 128], sizes = [1, 128], strides = [1, 1]} : vector<16x256xf32> to vector<1x128xf32>
    %c27 = arith.constant 27 : index
    %c0_39 = arith.constant 0 : index
    %74 = vector.load %arg5[%c27, %c0_39] : memref<32x128xf32, #tpu.memory_space<vmem>>, vector<1x128xf32>
    tpu.vector_store %arg5[%c27, %c0_39], %73 {strides = array<i32>} : memref<32x128xf32, #tpu.memory_space<vmem>>, vector<1x128xf32>,
    %75 = vector.extract_strided_slice %18 {offsets = [7, 0], sizes = [1, 128], strides = [1, 1]} : vector<16x256xf32> to vector<1x128xf32>
    %c28 = arith.constant 28 : index
    %c0_40 = arith.constant 0 : index
    %76 = vector.load %arg5[%c28, %c0_40] : memref<32x128xf32, #tpu.memory_space<vmem>>, vector<1x128xf32>
    tpu.vector_store %arg5[%c28, %c0_40], %75 {strides = array<i32>} : memref<32x128xf32, #tpu.memory_space<vmem>>, vector<1x128xf32>,
    %77 = vector.extract_strided_slice %18 {offsets = [0, 128], sizes = [1, 128], strides = [1, 1]} : vector<16x256xf32> to vector<1x128xf32>
    %c30 = arith.constant 30 : index
    %c0_41 = arith.constant 0 : index
    %78 = vector.load %arg5[%c30, %c0_41] : memref<32x128xf32, #tpu.memory_space<vmem>>, vector<1x128xf32>
    tpu.vector_store %arg5[%c30, %c0_41], %77 {strides = array<i32>} : memref<32x128xf32, #tpu.memory_space<vmem>>, vector<1x128xf32>,
    %79 = vector.extract_strided_slice %18 {offsets = [15, 0], sizes = [1, 128], strides = [1, 1]} : vector<16x256xf32> to vector<1x128xf32>
    %c29 = arith.constant 29 : index
    %c0_42 = arith.constant 0 : index
    %80 = vector.load %arg5[%c29, %c0_42] : memref<32x128xf32, #tpu.memory_space<vmem>>, vector<1x128xf32>
    tpu.vector_store %arg5[%c29, %c0_42], %79 {strides = array<i32>} : memref<32x128xf32, #tpu.memory_space<vmem>>, vector<1x128xf32>,
    %81 = vector.extract_strided_slice %18 {offsets = [8, 128], sizes = [1, 128], strides = [1, 1]} : vector<16x256xf32> to vector<1x128xf32>
    %c31 = arith.constant 31 : index
    %c0_43 = arith.constant 0 : index
    %82 = vector.load %arg5[%c31, %c0_43] : memref<32x128xf32, #tpu.memory_space<vmem>>, vector<1x128xf32>
    tpu.vector_store %arg5[%c31, %c0_43], %81 {strides = array<i32>} : memref<32x128xf32, #tpu.memory_space<vmem>>, vector<1x128xf32>,
    %cst_44 = arith.constant 0.000000e+00 : f32
    %83 = vector.broadcast %cst_44 : f32 to vector<4x32xf32>
    %cst_45 = arith.constant 0.000000e+00 : f32
    %84 = vector.broadcast %cst_45 : f32 to vector<4x32xf32>
    %85 = arith.truncf %83 : vector<4x32xf32> to vector<4x32xbf16>
    %cst_46 = arith.constant dense<0.000000e+00> : vector<4x256xf32>
    %86 = tpu.matmul %85, %13, %cst_46 {dimension_numbers = #tpu.dot_dimension_numbers<[1], [0], [0], [1], [0, 0, 1, 1], [], []>} : vector<4x32xbf16>, vector<32x256xbf16>, vector<4x256xf32> -> vector<4x256xf32>
    %87 = vector.extract_strided_slice %86 {offsets = [0, 0], sizes = [4, 128], strides = [1, 1]} : vector<4x256xf32> to vector<4x128xf32>
    %88 = vector.extract_strided_slice %86 {offsets = [0, 128], sizes = [4, 128], strides = [1, 1]} : vector<4x256xf32> to vector<4x128xf32>
    %89 = arith.select %2, %87, %88 : vector<4x128xi1>, vector<4x128xf32>
    %c0_47 = arith.constant 0 : index
    %c0_48 = arith.constant 0 : index
    %90 = vector.load %arg5[%c0_47, %c0_48] : memref<32x128xf32, #tpu.memory_space<vmem>>, vector<4x128xf32>
    %91 = arith.addf %90, %89 : vector<4x128xf32>
    %cst_49 = arith.constant 5.000000e-01 : f32
    %92 = vector.broadcast %cst_49 : f32 to vector<4x128xf32>
    %93 = arith.mulf %92, %91 : vector<4x128xf32>
    %94 = arith.select %8, %91, %93 : vector<4x128xi1>, vector<4x128xf32>
    %95 = math.tanh %94 : vector<4x128xf32>
    %cst_50 = arith.constant 5.000000e-01 : f32
    %96 = vector.broadcast %cst_50 : f32 to vector<4x128xf32>
    %97 = arith.mulf %96, %95 : vector<4x128xf32>
    %cst_51 = arith.constant 5.000000e-01 : f32
    %98 = vector.broadcast %cst_51 : f32 to vector<4x128xf32>
    %99 = arith.addf %97, %98 : vector<4x128xf32>
    %100 = arith.select %8, %95, %99 : vector<4x128xi1>, vector<4x128xf32>
    %101 = vector.extract_strided_slice %100 {offsets = [0, 0], sizes = [4, 32], strides = [1, 1]} : vector<4x128xf32> to vector<4x32xf32>
    %102 = vector.extract_strided_slice %100 {offsets = [0, 32], sizes = [4, 32], strides = [1, 1]} : vector<4x128xf32> to vector<4x32xf32>
    %103 = vector.extract_strided_slice %100 {offsets = [0, 64], sizes = [4, 32], strides = [1, 1]} : vector<4x128xf32> to vector<4x32xf32>
    %104 = vector.extract_strided_slice %100 {offsets = [0, 96], sizes = [4, 32], strides = [1, 1]} : vector<4x128xf32> to vector<4x32xf32>
    %105 = arith.mulf %102, %84 : vector<4x32xf32>
    %106 = arith.mulf %101, %103 : vector<4x32xf32>
    %107 = arith.addf %105, %106 : vector<4x32xf32>
    %108 = math.tanh %107 : vector<4x32xf32>
    %109 = arith.mulf %104, %108 : vector<4x32xf32>
    %110 = arith.truncf %109 : vector<4x32xf32> to vector<4x32xbf16>
    %cst_52 = arith.constant dense<0.000000e+00> : vector<4x256xf32>
    %111 = tpu.matmul %110, %13, %cst_52 {dimension_numbers = #tpu.dot_dimension_numbers<[1], [0], [0], [1], [0, 0, 1, 1], [], []>} : vector<4x32xbf16>, vector<32x256xbf16>, vector<4x256xf32> -> vector<4x256xf32>
    %112 = vector.extract_strided_slice %111 {offsets = [0, 0], sizes = [4, 128], strides = [1, 1]} : vector<4x256xf32> to vector<4x128xf32>
    %113 = vector.extract_strided_slice %111 {offsets = [0, 128], sizes = [4, 128], strides = [1, 1]} : vector<4x256xf32> to vector<4x128xf32>
    %114 = arith.select %2, %112, %113 : vector<4x128xi1>, vector<4x128xf32>
    %c4_53 = arith.constant 4 : index
    %c0_54 = arith.constant 0 : index
    %115 = vector.load %arg5[%c4_53, %c0_54] : memref<32x128xf32, #tpu.memory_space<vmem>>, vector<4x128xf32>
    %116 = arith.addf %115, %114 : vector<4x128xf32>
    %cst_55 = arith.constant 5.000000e-01 : f32
    %117 = vector.broadcast %cst_55 : f32 to vector<4x128xf32>
    %118 = arith.mulf %117, %116 : vector<4x128xf32>
    %119 = arith.select %8, %116, %118 : vector<4x128xi1>, vector<4x128xf32>
    %120 = math.tanh %119 : vector<4x128xf32>
    %cst_56 = arith.constant 5.000000e-01 : f32
    %121 = vector.broadcast %cst_56 : f32 to vector<4x128xf32>
    %122 = arith.mulf %121, %120 : vector<4x128xf32>
    %cst_57 = arith.constant 5.000000e-01 : f32
    %123 = vector.broadcast %cst_57 : f32 to vector<4x128xf32>
    %124 = arith.addf %122, %123 : vector<4x128xf32>
    %125 = arith.select %8, %120, %124 : vector<4x128xi1>, vector<4x128xf32>
    %126 = vector.extract_strided_slice %125 {offsets = [0, 0], sizes = [4, 32], strides = [1, 1]} : vector<4x128xf32> to vector<4x32xf32>
    %127 = vector.extract_strided_slice %125 {offsets = [0, 32], sizes = [4, 32], strides = [1, 1]} : vector<4x128xf32> to vector<4x32xf32>
    %128 = vector.extract_strided_slice %125 {offsets = [0, 64], sizes = [4, 32], strides = [1, 1]} : vector<4x128xf32> to vector<4x32xf32>
    %129 = vector.extract_strided_slice %125 {offsets = [0, 96], sizes = [4, 32], strides = [1, 1]} : vector<4x128xf32> to vector<4x32xf32>
    %130 = arith.mulf %127, %107 : vector<4x32xf32>
    %131 = arith.mulf %126, %128 : vector<4x32xf32>
    %132 = arith.addf %130, %131 : vector<4x32xf32>
    %133 = math.tanh %132 : vector<4x32xf32>
    %134 = arith.mulf %129, %133 : vector<4x32xf32>
    %135 = arith.truncf %134 : vector<4x32xf32> to vector<4x32xbf16>
    %cst_58 = arith.constant dense<0.000000e+00> : vector<4x256xf32>
    %136 = tpu.matmul %135, %13, %cst_58 {dimension_numbers = #tpu.dot_dimension_numbers<[1], [0], [0], [1], [0, 0, 1, 1], [], []>} : vector<4x32xbf16>, vector<32x256xbf16>, vector<4x256xf32> -> vector<4x256xf32>
    %137 = vector.extract_strided_slice %136 {offsets = [0, 0], sizes = [4, 128], strides = [1, 1]} : vector<4x256xf32> to vector<4x128xf32>
    %138 = vector.extract_strided_slice %136 {offsets = [0, 128], sizes = [4, 128], strides = [1, 1]} : vector<4x256xf32> to vector<4x128xf32>
    %139 = arith.select %2, %137, %138 : vector<4x128xi1>, vector<4x128xf32>
    %c8_59 = arith.constant 8 : index
    %c0_60 = arith.constant 0 : index
    %140 = vector.load %arg5[%c8_59, %c0_60] : memref<32x128xf32, #tpu.memory_space<vmem>>, vector<4x128xf32>
    %141 = arith.addf %140, %139 : vector<4x128xf32>
    %cst_61 = arith.constant 5.000000e-01 : f32
    %142 = vector.broadcast %cst_61 : f32 to vector<4x128xf32>
    %143 = arith.mulf %142, %141 : vector<4x128xf32>
    %144 = arith.select %8, %141, %143 : vector<4x128xi1>, vector<4x128xf32>
    %145 = math.tanh %144 : vector<4x128xf32>
    %cst_62 = arith.constant 5.000000e-01 : f32
    %146 = vector.broadcast %cst_62 : f32 to vector<4x128xf32>
    %147 = arith.mulf %146, %145 : vector<4x128xf32>
    %cst_63 = arith.constant 5.000000e-01 : f32
    %148 = vector.broadcast %cst_63 : f32 to vector<4x128xf32>
    %149 = arith.addf %147, %148 : vector<4x128xf32>
    %150 = arith.select %8, %145, %149 : vector<4x128xi1>, vector<4x128xf32>
    %151 = vector.extract_strided_slice %150 {offsets = [0, 0], sizes = [4, 32], strides = [1, 1]} : vector<4x128xf32> to vector<4x32xf32>
    %152 = vector.extract_strided_slice %150 {offsets = [0, 32], sizes = [4, 32], strides = [1, 1]} : vector<4x128xf32> to vector<4x32xf32>
    %153 = vector.extract_strided_slice %150 {offsets = [0, 64], sizes = [4, 32], strides = [1, 1]} : vector<4x128xf32> to vector<4x32xf32>
    %154 = vector.extract_strided_slice %150 {offsets = [0, 96], sizes = [4, 32], strides = [1, 1]} : vector<4x128xf32> to vector<4x32xf32>
    %155 = arith.mulf %152, %132 : vector<4x32xf32>
    %156 = arith.mulf %151, %153 : vector<4x32xf32>
    %157 = arith.addf %155, %156 : vector<4x32xf32>
    %158 = math.tanh %157 : vector<4x32xf32>
    %159 = arith.mulf %154, %158 : vector<4x32xf32>
    %160 = arith.truncf %159 : vector<4x32xf32> to vector<4x32xbf16>
    %cst_64 = arith.constant dense<0.000000e+00> : vector<4x256xf32>
    %161 = tpu.matmul %160, %13, %cst_64 {dimension_numbers = #tpu.dot_dimension_numbers<[1], [0], [0], [1], [0, 0, 1, 1], [], []>} : vector<4x32xbf16>, vector<32x256xbf16>, vector<4x256xf32> -> vector<4x256xf32>
    %162 = vector.extract_strided_slice %161 {offsets = [0, 0], sizes = [4, 128], strides = [1, 1]} : vector<4x256xf32> to vector<4x128xf32>
    %163 = vector.extract_strided_slice %161 {offsets = [0, 128], sizes = [4, 128], strides = [1, 1]} : vector<4x256xf32> to vector<4x128xf32>
    %164 = arith.select %2, %162, %163 : vector<4x128xi1>, vector<4x128xf32>
    %c12_65 = arith.constant 12 : index
    %c0_66 = arith.constant 0 : index
    %165 = vector.load %arg5[%c12_65, %c0_66] : memref<32x128xf32, #tpu.memory_space<vmem>>, vector<4x128xf32>
    %166 = arith.addf %165, %164 : vector<4x128xf32>
    %cst_67 = arith.constant 5.000000e-01 : f32
    %167 = vector.broadcast %cst_67 : f32 to vector<4x128xf32>
    %168 = arith.mulf %167, %166 : vector<4x128xf32>
    %169 = arith.select %8, %166, %168 : vector<4x128xi1>, vector<4x128xf32>
    %170 = math.tanh %169 : vector<4x128xf32>
    %cst_68 = arith.constant 5.000000e-01 : f32
    %171 = vector.broadcast %cst_68 : f32 to vector<4x128xf32>
    %172 = arith.mulf %171, %170 : vector<4x128xf32>
    %cst_69 = arith.constant 5.000000e-01 : f32
    %173 = vector.broadcast %cst_69 : f32 to vector<4x128xf32>
    %174 = arith.addf %172, %173 : vector<4x128xf32>
    %175 = arith.select %8, %170, %174 : vector<4x128xi1>, vector<4x128xf32>
    %176 = vector.extract_strided_slice %175 {offsets = [0, 0], sizes = [4, 32], strides = [1, 1]} : vector<4x128xf32> to vector<4x32xf32>
    %177 = vector.extract_strided_slice %175 {offsets = [0, 32], sizes = [4, 32], strides = [1, 1]} : vector<4x128xf32> to vector<4x32xf32>
    %178 = vector.extract_strided_slice %175 {offsets = [0, 64], sizes = [4, 32], strides = [1, 1]} : vector<4x128xf32> to vector<4x32xf32>
    %179 = vector.extract_strided_slice %175 {offsets = [0, 96], sizes = [4, 32], strides = [1, 1]} : vector<4x128xf32> to vector<4x32xf32>
    %180 = arith.mulf %177, %157 : vector<4x32xf32>
    %181 = arith.mulf %176, %178 : vector<4x32xf32>
    %182 = arith.addf %180, %181 : vector<4x32xf32>
    %183 = math.tanh %182 : vector<4x32xf32>
    %184 = arith.mulf %179, %183 : vector<4x32xf32>
    %185 = arith.truncf %184 : vector<4x32xf32> to vector<4x32xbf16>
    %cst_70 = arith.constant dense<0.000000e+00> : vector<4x256xf32>
    %186 = tpu.matmul %185, %13, %cst_70 {dimension_numbers = #tpu.dot_dimension_numbers<[1], [0], [0], [1], [0, 0, 1, 1], [], []>} : vector<4x32xbf16>, vector<32x256xbf16>, vector<4x256xf32> -> vector<4x256xf32>
    %187 = vector.extract_strided_slice %186 {offsets = [0, 0], sizes = [4, 128], strides = [1, 1]} : vector<4x256xf32> to vector<4x128xf32>
    %188 = vector.extract_strided_slice %186 {offsets = [0, 128], sizes = [4, 128], strides = [1, 1]} : vector<4x256xf32> to vector<4x128xf32>
    %189 = arith.select %2, %187, %188 : vector<4x128xi1>, vector<4x128xf32>
    %c16_71 = arith.constant 16 : index
    %c0_72 = arith.constant 0 : index
    %190 = vector.load %arg5[%c16_71, %c0_72] : memref<32x128xf32, #tpu.memory_space<vmem>>, vector<4x128xf32>
    %191 = arith.addf %190, %189 : vector<4x128xf32>
    %cst_73 = arith.constant 5.000000e-01 : f32
    %192 = vector.broadcast %cst_73 : f32 to vector<4x128xf32>
    %193 = arith.mulf %192, %191 : vector<4x128xf32>
    %194 = arith.select %8, %191, %193 : vector<4x128xi1>, vector<4x128xf32>
    %195 = math.tanh %194 : vector<4x128xf32>
    %cst_74 = arith.constant 5.000000e-01 : f32
    %196 = vector.broadcast %cst_74 : f32 to vector<4x128xf32>
    %197 = arith.mulf %196, %195 : vector<4x128xf32>
    %cst_75 = arith.constant 5.000000e-01 : f32
    %198 = vector.broadcast %cst_75 : f32 to vector<4x128xf32>
    %199 = arith.addf %197, %198 : vector<4x128xf32>
    %200 = arith.select %8, %195, %199 : vector<4x128xi1>, vector<4x128xf32>
    %201 = vector.extract_strided_slice %200 {offsets = [0, 0], sizes = [4, 32], strides = [1, 1]} : vector<4x128xf32> to vector<4x32xf32>
    %202 = vector.extract_strided_slice %200 {offsets = [0, 32], sizes = [4, 32], strides = [1, 1]} : vector<4x128xf32> to vector<4x32xf32>
    %203 = vector.extract_strided_slice %200 {offsets = [0, 64], sizes = [4, 32], strides = [1, 1]} : vector<4x128xf32> to vector<4x32xf32>
    %204 = vector.extract_strided_slice %200 {offsets = [0, 96], sizes = [4, 32], strides = [1, 1]} : vector<4x128xf32> to vector<4x32xf32>
    %205 = arith.mulf %202, %182 : vector<4x32xf32>
    %206 = arith.mulf %201, %203 : vector<4x32xf32>
    %207 = arith.addf %205, %206 : vector<4x32xf32>
    %208 = math.tanh %207 : vector<4x32xf32>
    %209 = arith.mulf %204, %208 : vector<4x32xf32>
    %210 = arith.truncf %209 : vector<4x32xf32> to vector<4x32xbf16>
    %cst_76 = arith.constant dense<0.000000e+00> : vector<4x256xf32>
    %211 = tpu.matmul %210, %13, %cst_76 {dimension_numbers = #tpu.dot_dimension_numbers<[1], [0], [0], [1], [0, 0, 1, 1], [], []>} : vector<4x32xbf16>, vector<32x256xbf16>, vector<4x256xf32> -> vector<4x256xf32>
    %212 = vector.extract_strided_slice %211 {offsets = [0, 0], sizes = [4, 128], strides = [1, 1]} : vector<4x256xf32> to vector<4x128xf32>
    %213 = vector.extract_strided_slice %211 {offsets = [0, 128], sizes = [4, 128], strides = [1, 1]} : vector<4x256xf32> to vector<4x128xf32>
    %214 = arith.select %2, %212, %213 : vector<4x128xi1>, vector<4x128xf32>
    %c20_77 = arith.constant 20 : index
    %c0_78 = arith.constant 0 : index
    %215 = vector.load %arg5[%c20_77, %c0_78] : memref<32x128xf32, #tpu.memory_space<vmem>>, vector<4x128xf32>
    %216 = arith.addf %215, %214 : vector<4x128xf32>
    %cst_79 = arith.constant 5.000000e-01 : f32
    %217 = vector.broadcast %cst_79 : f32 to vector<4x128xf32>
    %218 = arith.mulf %217, %216 : vector<4x128xf32>
    %219 = arith.select %8, %216, %218 : vector<4x128xi1>, vector<4x128xf32>
    %220 = math.tanh %219 : vector<4x128xf32>
    %cst_80 = arith.constant 5.000000e-01 : f32
    %221 = vector.broadcast %cst_80 : f32 to vector<4x128xf32>
    %222 = arith.mulf %221, %220 : vector<4x128xf32>
    %cst_81 = arith.constant 5.000000e-01 : f32
    %223 = vector.broadcast %cst_81 : f32 to vector<4x128xf32>
    %224 = arith.addf %222, %223 : vector<4x128xf32>
    %225 = arith.select %8, %220, %224 : vector<4x128xi1>, vector<4x128xf32>
    %226 = vector.extract_strided_slice %225 {offsets = [0, 0], sizes = [4, 32], strides = [1, 1]} : vector<4x128xf32> to vector<4x32xf32>
    %227 = vector.extract_strided_slice %225 {offsets = [0, 32], sizes = [4, 32], strides = [1, 1]} : vector<4x128xf32> to vector<4x32xf32>
    %228 = vector.extract_strided_slice %225 {offsets = [0, 64], sizes = [4, 32], strides = [1, 1]} : vector<4x128xf32> to vector<4x32xf32>
    %229 = vector.extract_strided_slice %225 {offsets = [0, 96], sizes = [4, 32], strides = [1, 1]} : vector<4x128xf32> to vector<4x32xf32>
    %230 = arith.mulf %227, %207 : vector<4x32xf32>
    %231 = arith.mulf %226, %228 : vector<4x32xf32>
    %232 = arith.addf %230, %231 : vector<4x32xf32>
    %233 = math.tanh %232 : vector<4x32xf32>
    %234 = arith.mulf %229, %233 : vector<4x32xf32>
    %235 = arith.truncf %234 : vector<4x32xf32> to vector<4x32xbf16>
    %cst_82 = arith.constant dense<0.000000e+00> : vector<4x256xf32>
    %236 = tpu.matmul %235, %13, %cst_82 {dimension_numbers = #tpu.dot_dimension_numbers<[1], [0], [0], [1], [0, 0, 1, 1], [], []>} : vector<4x32xbf16>, vector<32x256xbf16>, vector<4x256xf32> -> vector<4x256xf32>
    %237 = vector.extract_strided_slice %236 {offsets = [0, 0], sizes = [4, 128], strides = [1, 1]} : vector<4x256xf32> to vector<4x128xf32>
    %238 = vector.extract_strided_slice %236 {offsets = [0, 128], sizes = [4, 128], strides = [1, 1]} : vector<4x256xf32> to vector<4x128xf32>
    %239 = arith.select %2, %237, %238 : vector<4x128xi1>, vector<4x128xf32>
    %c24_83 = arith.constant 24 : index
    %c0_84 = arith.constant 0 : index
    %240 = vector.load %arg5[%c24_83, %c0_84] : memref<32x128xf32, #tpu.memory_space<vmem>>, vector<4x128xf32>
    %241 = arith.addf %240, %239 : vector<4x128xf32>
    %cst_85 = arith.constant 5.000000e-01 : f32
    %242 = vector.broadcast %cst_85 : f32 to vector<4x128xf32>
    %243 = arith.mulf %242, %241 : vector<4x128xf32>
    %244 = arith.select %8, %241, %243 : vector<4x128xi1>, vector<4x128xf32>
    %245 = math.tanh %244 : vector<4x128xf32>
    %cst_86 = arith.constant 5.000000e-01 : f32
    %246 = vector.broadcast %cst_86 : f32 to vector<4x128xf32>
    %247 = arith.mulf %246, %245 : vector<4x128xf32>
    %cst_87 = arith.constant 5.000000e-01 : f32
    %248 = vector.broadcast %cst_87 : f32 to vector<4x128xf32>
    %249 = arith.addf %247, %248 : vector<4x128xf32>
    %250 = arith.select %8, %245, %249 : vector<4x128xi1>, vector<4x128xf32>
    %251 = vector.extract_strided_slice %250 {offsets = [0, 0], sizes = [4, 32], strides = [1, 1]} : vector<4x128xf32> to vector<4x32xf32>
    %252 = vector.extract_strided_slice %250 {offsets = [0, 32], sizes = [4, 32], strides = [1, 1]} : vector<4x128xf32> to vector<4x32xf32>
    %253 = vector.extract_strided_slice %250 {offsets = [0, 64], sizes = [4, 32], strides = [1, 1]} : vector<4x128xf32> to vector<4x32xf32>
    %254 = vector.extract_strided_slice %250 {offsets = [0, 96], sizes = [4, 32], strides = [1, 1]} : vector<4x128xf32> to vector<4x32xf32>
    %255 = arith.mulf %252, %232 : vector<4x32xf32>
    %256 = arith.mulf %251, %253 : vector<4x32xf32>
    %257 = arith.addf %255, %256 : vector<4x32xf32>
    %258 = math.tanh %257 : vector<4x32xf32>
    %259 = arith.mulf %254, %258 : vector<4x32xf32>
    %260 = arith.truncf %259 : vector<4x32xf32> to vector<4x32xbf16>
    %cst_88 = arith.constant dense<0.000000e+00> : vector<4x256xf32>
    %261 = tpu.matmul %260, %13, %cst_88 {dimension_numbers = #tpu.dot_dimension_numbers<[1], [0], [0], [1], [0, 0, 1, 1], [], []>} : vector<4x32xbf16>, vector<32x256xbf16>, vector<4x256xf32> -> vector<4x256xf32>
    %262 = vector.extract_strided_slice %261 {offsets = [0, 0], sizes = [4, 128], strides = [1, 1]} : vector<4x256xf32> to vector<4x128xf32>
    %263 = vector.extract_strided_slice %261 {offsets = [0, 128], sizes = [4, 128], strides = [1, 1]} : vector<4x256xf32> to vector<4x128xf32>
    %264 = arith.select %2, %262, %263 : vector<4x128xi1>, vector<4x128xf32>
    %c28_89 = arith.constant 28 : index
    %c0_90 = arith.constant 0 : index
    %265 = vector.load %arg5[%c28_89, %c0_90] : memref<32x128xf32, #tpu.memory_space<vmem>>, vector<4x128xf32>
    %266 = arith.addf %265, %264 : vector<4x128xf32>
    %cst_91 = arith.constant 5.000000e-01 : f32
    %267 = vector.broadcast %cst_91 : f32 to vector<4x128xf32>
    %268 = arith.mulf %267, %266 : vector<4x128xf32>
    %269 = arith.select %8, %266, %268 : vector<4x128xi1>, vector<4x128xf32>
    %270 = math.tanh %269 : vector<4x128xf32>
    %cst_92 = arith.constant 5.000000e-01 : f32
    %271 = vector.broadcast %cst_92 : f32 to vector<4x128xf32>
    %272 = arith.mulf %271, %270 : vector<4x128xf32>
    %cst_93 = arith.constant 5.000000e-01 : f32
    %273 = vector.broadcast %cst_93 : f32 to vector<4x128xf32>
    %274 = arith.addf %272, %273 : vector<4x128xf32>
    %275 = arith.select %8, %270, %274 : vector<4x128xi1>, vector<4x128xf32>
    %276 = vector.extract_strided_slice %275 {offsets = [0, 0], sizes = [4, 32], strides = [1, 1]} : vector<4x128xf32> to vector<4x32xf32>
    %277 = vector.extract_strided_slice %275 {offsets = [0, 32], sizes = [4, 32], strides = [1, 1]} : vector<4x128xf32> to vector<4x32xf32>
    %278 = vector.extract_strided_slice %275 {offsets = [0, 64], sizes = [4, 32], strides = [1, 1]} : vector<4x128xf32> to vector<4x32xf32>
    %279 = vector.extract_strided_slice %275 {offsets = [0, 96], sizes = [4, 32], strides = [1, 1]} : vector<4x128xf32> to vector<4x32xf32>
    %280 = arith.mulf %277, %257 : vector<4x32xf32>
    %281 = arith.mulf %276, %278 : vector<4x32xf32>
    %282 = arith.addf %280, %281 : vector<4x32xf32>
    %283 = math.tanh %282 : vector<4x32xf32>
    %284 = arith.mulf %279, %283 : vector<4x32xf32>
    %285 = vector.extract_strided_slice %109 {offsets = [0, 0], sizes = [2, 32], strides = [1, 1]} : vector<4x32xf32> to vector<2x32xf32>
    %c0_94 = arith.constant 0 : index
    %c0_95 = arith.constant 0 : index
    %286 = vector.load %arg7[%c0_94, %c0_95] : memref<16x64xf32, #tpu.memory_space<vmem>>, vector<2x32xf32>
    tpu.vector_store %arg7[%c0_94, %c0_95], %285 {strides = array<i32>} : memref<16x64xf32, #tpu.memory_space<vmem>>, vector<2x32xf32>,
    %287 = vector.extract_strided_slice %284 {offsets = [2, 0], sizes = [2, 32], strides = [1, 1]} : vector<4x32xf32> to vector<2x32xf32>
    %c0_96 = arith.constant 0 : index
    %c32_97 = arith.constant 32 : index
    %288 = vector.load %arg7[%c0_96, %c32_97] : memref<16x64xf32, #tpu.memory_space<vmem>>, vector<2x32xf32>
    tpu.vector_store %arg7[%c0_96, %c32_97], %287 {strides = array<i32>} : memref<16x64xf32, #tpu.memory_space<vmem>>, vector<2x32xf32>,
    %289 = vector.extract_strided_slice %134 {offsets = [0, 0], sizes = [2, 32], strides = [1, 1]} : vector<4x32xf32> to vector<2x32xf32>
    %c2_98 = arith.constant 2 : index
    %c0_99 = arith.constant 0 : index
    %290 = vector.load %arg7[%c2_98, %c0_99] : memref<16x64xf32, #tpu.memory_space<vmem>>, vector<2x32xf32>
    tpu.vector_store %arg7[%c2_98, %c0_99], %289 {strides = array<i32>} : memref<16x64xf32, #tpu.memory_space<vmem>>, vector<2x32xf32>,
    %291 = vector.extract_strided_slice %259 {offsets = [2, 0], sizes = [2, 32], strides = [1, 1]} : vector<4x32xf32> to vector<2x32xf32>
    %c2_100 = arith.constant 2 : index
    %c32_101 = arith.constant 32 : index
    %292 = vector.load %arg7[%c2_100, %c32_101] : memref<16x64xf32, #tpu.memory_space<vmem>>, vector<2x32xf32>
    tpu.vector_store %arg7[%c2_100, %c32_101], %291 {strides = array<i32>} : memref<16x64xf32, #tpu.memory_space<vmem>>, vector<2x32xf32>,
    %293 = vector.extract_strided_slice %159 {offsets = [0, 0], sizes = [2, 32], strides = [1, 1]} : vector<4x32xf32> to vector<2x32xf32>
    %c4_102 = arith.constant 4 : index
    %c0_103 = arith.constant 0 : index
    %294 = vector.load %arg7[%c4_102, %c0_103] : memref<16x64xf32, #tpu.memory_space<vmem>>, vector<2x32xf32>
    tpu.vector_store %arg7[%c4_102, %c0_103], %293 {strides = array<i32>} : memref<16x64xf32, #tpu.memory_space<vmem>>, vector<2x32xf32>,
    %295 = vector.extract_strided_slice %234 {offsets = [2, 0], sizes = [2, 32], strides = [1, 1]} : vector<4x32xf32> to vector<2x32xf32>
    %c4_104 = arith.constant 4 : index
    %c32_105 = arith.constant 32 : index
    %296 = vector.load %arg7[%c4_104, %c32_105] : memref<16x64xf32, #tpu.memory_space<vmem>>, vector<2x32xf32>
    tpu.vector_store %arg7[%c4_104, %c32_105], %295 {strides = array<i32>} : memref<16x64xf32, #tpu.memory_space<vmem>>, vector<2x32xf32>,
    %297 = vector.extract_strided_slice %184 {offsets = [0, 0], sizes = [2, 32], strides = [1, 1]} : vector<4x32xf32> to vector<2x32xf32>
    %c6_106 = arith.constant 6 : index
    %c0_107 = arith.constant 0 : index
    %298 = vector.load %arg7[%c6_106, %c0_107] : memref<16x64xf32, #tpu.memory_space<vmem>>, vector<2x32xf32>
    tpu.vector_store %arg7[%c6_106, %c0_107], %297 {strides = array<i32>} : memref<16x64xf32, #tpu.memory_space<vmem>>, vector<2x32xf32>,
    %299 = vector.extract_strided_slice %209 {offsets = [2, 0], sizes = [2, 32], strides = [1, 1]} : vector<4x32xf32> to vector<2x32xf32>
    %c6_108 = arith.constant 6 : index
    %c32_109 = arith.constant 32 : index
    %300 = vector.load %arg7[%c6_108, %c32_109] : memref<16x64xf32, #tpu.memory_space<vmem>>, vector<2x32xf32>
    tpu.vector_store %arg7[%c6_108, %c32_109], %299 {strides = array<i32>} : memref<16x64xf32, #tpu.memory_space<vmem>>, vector<2x32xf32>,
    %301 = vector.extract_strided_slice %209 {offsets = [0, 0], sizes = [2, 32], strides = [1, 1]} : vector<4x32xf32> to vector<2x32xf32>
    %c8_110 = arith.constant 8 : index
    %c0_111 = arith.constant 0 : index
    %302 = vector.load %arg7[%c8_110, %c0_111] : memref<16x64xf32, #tpu.memory_space<vmem>>, vector<2x32xf32>
    tpu.vector_store %arg7[%c8_110, %c0_111], %301 {strides = array<i32>} : memref<16x64xf32, #tpu.memory_space<vmem>>, vector<2x32xf32>,
    %303 = vector.extract_strided_slice %184 {offsets = [2, 0], sizes = [2, 32], strides = [1, 1]} : vector<4x32xf32> to vector<2x32xf32>
    %c8_112 = arith.constant 8 : index
    %c32_113 = arith.constant 32 : index
    %304 = vector.load %arg7[%c8_112, %c32_113] : memref<16x64xf32, #tpu.memory_space<vmem>>, vector<2x32xf32>
    tpu.vector_store %arg7[%c8_112, %c32_113], %303 {strides = array<i32>} : memref<16x64xf32, #tpu.memory_space<vmem>>, vector<2x32xf32>,
    %305 = vector.extract_strided_slice %234 {offsets = [0, 0], sizes = [2, 32], strides = [1, 1]} : vector<4x32xf32> to vector<2x32xf32>
    %c10_114 = arith.constant 10 : index
    %c0_115 = arith.constant 0 : index
    %306 = vector.load %arg7[%c10_114, %c0_115] : memref<16x64xf32, #tpu.memory_space<vmem>>, vector<2x32xf32>
    tpu.vector_store %arg7[%c10_114, %c0_115], %305 {strides = array<i32>} : memref<16x64xf32, #tpu.memory_space<vmem>>, vector<2x32xf32>,
    %307 = vector.extract_strided_slice %159 {offsets = [2, 0], sizes = [2, 32], strides = [1, 1]} : vector<4x32xf32> to vector<2x32xf32>
    %c10_116 = arith.constant 10 : index
    %c32_117 = arith.constant 32 : index
    %308 = vector.load %arg7[%c10_116, %c32_117] : memref<16x64xf32, #tpu.memory_space<vmem>>, vector<2x32xf32>
    tpu.vector_store %arg7[%c10_116, %c32_117], %307 {strides = array<i32>} : memref<16x64xf32, #tpu.memory_space<vmem>>, vector<2x32xf32>,
    %309 = vector.extract_strided_slice %259 {offsets = [0, 0], sizes = [2, 32], strides = [1, 1]} : vector<4x32xf32> to vector<2x32xf32>
    %c12_118 = arith.constant 12 : index
    %c0_119 = arith.constant 0 : index
    %310 = vector.load %arg7[%c12_118, %c0_119] : memref<16x64xf32, #tpu.memory_space<vmem>>, vector<2x32xf32>
    tpu.vector_store %arg7[%c12_118, %c0_119], %309 {strides = array<i32>} : memref<16x64xf32, #tpu.memory_space<vmem>>, vector<2x32xf32>,
    %311 = vector.extract_strided_slice %134 {offsets = [2, 0], sizes = [2, 32], strides = [1, 1]} : vector<4x32xf32> to vector<2x32xf32>
    %c12_120 = arith.constant 12 : index
    %c32_121 = arith.constant 32 : index
    %312 = vector.load %arg7[%c12_120, %c32_121] : memref<16x64xf32, #tpu.memory_space<vmem>>, vector<2x32xf32>
    tpu.vector_store %arg7[%c12_120, %c32_121], %311 {strides = array<i32>} : memref<16x64xf32, #tpu.memory_space<vmem>>, vector<2x32xf32>,
    %313 = vector.extract_strided_slice %284 {offsets = [0, 0], sizes = [2, 32], strides = [1, 1]} : vector<4x32xf32> to vector<2x32xf32>
    %c14_122 = arith.constant 14 : index
    %c0_123 = arith.constant 0 : index
    %314 = vector.load %arg7[%c14_122, %c0_123] : memref<16x64xf32, #tpu.memory_space<vmem>>, vector<2x32xf32>
    tpu.vector_store %arg7[%c14_122, %c0_123], %313 {strides = array<i32>} : memref<16x64xf32, #tpu.memory_space<vmem>>, vector<2x32xf32>,
    %315 = vector.extract_strided_slice %109 {offsets = [2, 0], sizes = [2, 32], strides = [1, 1]} : vector<4x32xf32> to vector<2x32xf32>
    %c14_124 = arith.constant 14 : index
    %c32_125 = arith.constant 32 : index
    %316 = vector.load %arg7[%c14_124, %c32_125] : memref<16x64xf32, #tpu.memory_space<vmem>>, vector<2x32xf32>
    tpu.vector_store %arg7[%c14_124, %c32_125], %315 {strides = array<i32>} : memref<16x64xf32, #tpu.memory_space<vmem>>, vector<2x32xf32>,
    %c0_126 = arith.constant 0 : index
    %c0_127 = arith.constant 0 : index
    %317 = vector.load %arg7[%c0_126, %c0_127] : memref<16x64xf32, #tpu.memory_space<vmem>>, vector<16x64xf32>
    %cst_128 = arith.constant dense<0.000000e+00> : vector<16x256xf32>
    %318 = tpu.matmul %317, %11, %cst_128 {dimension_numbers = #tpu.dot_dimension_numbers<[1], [0], [0], [1], [0, 0, 1, 1], [], []>} : vector<16x64xf32>, vector<64x256xf32>, vector<16x256xf32> -> vector<16x256xf32>
    %319 = vector.broadcast %12 : vector<1x256xf32> to vector<16x256xf32>
    %320 = arith.addf %318, %319 : vector<16x256xf32>
    %321 = vector.extract_strided_slice %320 {offsets = [0, 0], sizes = [2, 128], strides = [1, 1]} : vector<16x256xf32> to vector<2x128xf32>
    %c0_129 = arith.constant 0 : index
    %c0_130 = arith.constant 0 : index
    %322 = vector.load %arg6[%c0_129, %c0_130] : memref<32x128xf32, #tpu.memory_space<vmem>>, vector<2x128xf32>
    tpu.vector_store %arg6[%c0_129, %c0_130], %321 {strides = array<i32>} : memref<32x128xf32, #tpu.memory_space<vmem>>, vector<2x128xf32>,
    %323 = vector.extract_strided_slice %320 {offsets = [14, 128], sizes = [2, 128], strides = [1, 1]} : vector<16x256xf32> to vector<2x128xf32>
    %c2_131 = arith.constant 2 : index
    %c0_132 = arith.constant 0 : index
    %324 = vector.load %arg6[%c2_131, %c0_132] : memref<32x128xf32, #tpu.memory_space<vmem>>, vector<2x128xf32>
    tpu.vector_store %arg6[%c2_131, %c0_132], %323 {strides = array<i32>} : memref<32x128xf32, #tpu.memory_space<vmem>>, vector<2x128xf32>,
    %325 = vector.extract_strided_slice %320 {offsets = [2, 0], sizes = [2, 128], strides = [1, 1]} : vector<16x256xf32> to vector<2x128xf32>
    %c4_133 = arith.constant 4 : index
    %c0_134 = arith.constant 0 : index
    %326 = vector.load %arg6[%c4_133, %c0_134] : memref<32x128xf32, #tpu.memory_space<vmem>>, vector<2x128xf32>
    tpu.vector_store %arg6[%c4_133, %c0_134], %325 {strides = array<i32>} : memref<32x128xf32, #tpu.memory_space<vmem>>, vector<2x128xf32>,
    %327 = vector.extract_strided_slice %320 {offsets = [12, 128], sizes = [2, 128], strides = [1, 1]} : vector<16x256xf32> to vector<2x128xf32>
    %c6_135 = arith.constant 6 : index
    %c0_136 = arith.constant 0 : index
    %328 = vector.load %arg6[%c6_135, %c0_136] : memref<32x128xf32, #tpu.memory_space<vmem>>, vector<2x128xf32>
    tpu.vector_store %arg6[%c6_135, %c0_136], %327 {strides = array<i32>} : memref<32x128xf32, #tpu.memory_space<vmem>>, vector<2x128xf32>,
    %329 = vector.extract_strided_slice %320 {offsets = [4, 0], sizes = [2, 128], strides = [1, 1]} : vector<16x256xf32> to vector<2x128xf32>
    %c8_137 = arith.constant 8 : index
    %c0_138 = arith.constant 0 : index
    %330 = vector.load %arg6[%c8_137, %c0_138] : memref<32x128xf32, #tpu.memory_space<vmem>>, vector<2x128xf32>
    tpu.vector_store %arg6[%c8_137, %c0_138], %329 {strides = array<i32>} : memref<32x128xf32, #tpu.memory_space<vmem>>, vector<2x128xf32>,
    %331 = vector.extract_strided_slice %320 {offsets = [10, 128], sizes = [2, 128], strides = [1, 1]} : vector<16x256xf32> to vector<2x128xf32>
    %c10_139 = arith.constant 10 : index
    %c0_140 = arith.constant 0 : index
    %332 = vector.load %arg6[%c10_139, %c0_140] : memref<32x128xf32, #tpu.memory_space<vmem>>, vector<2x128xf32>
    tpu.vector_store %arg6[%c10_139, %c0_140], %331 {strides = array<i32>} : memref<32x128xf32, #tpu.memory_space<vmem>>, vector<2x128xf32>,
    %333 = vector.extract_strided_slice %320 {offsets = [6, 0], sizes = [2, 128], strides = [1, 1]} : vector<16x256xf32> to vector<2x128xf32>
    %c12_141 = arith.constant 12 : index
    %c0_142 = arith.constant 0 : index
    %334 = vector.load %arg6[%c12_141, %c0_142] : memref<32x128xf32, #tpu.memory_space<vmem>>, vector<2x128xf32>
    tpu.vector_store %arg6[%c12_141, %c0_142], %333 {strides = array<i32>} : memref<32x128xf32, #tpu.memory_space<vmem>>, vector<2x128xf32>,
    %335 = vector.extract_strided_slice %320 {offsets = [8, 128], sizes = [2, 128], strides = [1, 1]} : vector<16x256xf32> to vector<2x128xf32>
    %c14_143 = arith.constant 14 : index
    %c0_144 = arith.constant 0 : index
    %336 = vector.load %arg6[%c14_143, %c0_144] : memref<32x128xf32, #tpu.memory_space<vmem>>, vector<2x128xf32>
    tpu.vector_store %arg6[%c14_143, %c0_144], %335 {strides = array<i32>} : memref<32x128xf32, #tpu.memory_space<vmem>>, vector<2x128xf32>,
    %337 = vector.extract_strided_slice %320 {offsets = [8, 0], sizes = [2, 128], strides = [1, 1]} : vector<16x256xf32> to vector<2x128xf32>
    %c16_145 = arith.constant 16 : index
    %c0_146 = arith.constant 0 : index
    %338 = vector.load %arg6[%c16_145, %c0_146] : memref<32x128xf32, #tpu.memory_space<vmem>>, vector<2x128xf32>
    tpu.vector_store %arg6[%c16_145, %c0_146], %337 {strides = array<i32>} : memref<32x128xf32, #tpu.memory_space<vmem>>, vector<2x128xf32>,
    %339 = vector.extract_strided_slice %320 {offsets = [6, 128], sizes = [2, 128], strides = [1, 1]} : vector<16x256xf32> to vector<2x128xf32>
    %c18_147 = arith.constant 18 : index
    %c0_148 = arith.constant 0 : index
    %340 = vector.load %arg6[%c18_147, %c0_148] : memref<32x128xf32, #tpu.memory_space<vmem>>, vector<2x128xf32>
    tpu.vector_store %arg6[%c18_147, %c0_148], %339 {strides = array<i32>} : memref<32x128xf32, #tpu.memory_space<vmem>>, vector<2x128xf32>,
    %341 = vector.extract_strided_slice %320 {offsets = [10, 0], sizes = [2, 128], strides = [1, 1]} : vector<16x256xf32> to vector<2x128xf32>
    %c20_149 = arith.constant 20 : index
    %c0_150 = arith.constant 0 : index
    %342 = vector.load %arg6[%c20_149, %c0_150] : memref<32x128xf32, #tpu.memory_space<vmem>>, vector<2x128xf32>
    tpu.vector_store %arg6[%c20_149, %c0_150], %341 {strides = array<i32>} : memref<32x128xf32, #tpu.memory_space<vmem>>, vector<2x128xf32>,
    %343 = vector.extract_strided_slice %320 {offsets = [4, 128], sizes = [2, 128], strides = [1, 1]} : vector<16x256xf32> to vector<2x128xf32>
    %c22_151 = arith.constant 22 : index
    %c0_152 = arith.constant 0 : index
    %344 = vector.load %arg6[%c22_151, %c0_152] : memref<32x128xf32, #tpu.memory_space<vmem>>, vector<2x128xf32>
    tpu.vector_store %arg6[%c22_151, %c0_152], %343 {strides = array<i32>} : memref<32x128xf32, #tpu.memory_space<vmem>>, vector<2x128xf32>,
    %345 = vector.extract_strided_slice %320 {offsets = [12, 0], sizes = [2, 128], strides = [1, 1]} : vector<16x256xf32> to vector<2x128xf32>
    %c24_153 = arith.constant 24 : index
    %c0_154 = arith.constant 0 : index
    %346 = vector.load %arg6[%c24_153, %c0_154] : memref<32x128xf32, #tpu.memory_space<vmem>>, vector<2x128xf32>
    tpu.vector_store %arg6[%c24_153, %c0_154], %345 {strides = array<i32>} : memref<32x128xf32, #tpu.memory_space<vmem>>, vector<2x128xf32>,
    %347 = vector.extract_strided_slice %320 {offsets = [2, 128], sizes = [2, 128], strides = [1, 1]} : vector<16x256xf32> to vector<2x128xf32>
    %c26_155 = arith.constant 26 : index
    %c0_156 = arith.constant 0 : index
    %348 = vector.load %arg6[%c26_155, %c0_156] : memref<32x128xf32, #tpu.memory_space<vmem>>, vector<2x128xf32>
    tpu.vector_store %arg6[%c26_155, %c0_156], %347 {strides = array<i32>} : memref<32x128xf32, #tpu.memory_space<vmem>>, vector<2x128xf32>,
    %349 = vector.extract_strided_slice %320 {offsets = [14, 0], sizes = [2, 128], strides = [1, 1]} : vector<16x256xf32> to vector<2x128xf32>
    %c28_157 = arith.constant 28 : index
    %c0_158 = arith.constant 0 : index
    %350 = vector.load %arg6[%c28_157, %c0_158] : memref<32x128xf32, #tpu.memory_space<vmem>>, vector<2x128xf32>
    tpu.vector_store %arg6[%c28_157, %c0_158], %349 {strides = array<i32>} : memref<32x128xf32, #tpu.memory_space<vmem>>, vector<2x128xf32>,
    %351 = vector.extract_strided_slice %320 {offsets = [0, 128], sizes = [2, 128], strides = [1, 1]} : vector<16x256xf32> to vector<2x128xf32>
    %c30_159 = arith.constant 30 : index
    %c0_160 = arith.constant 0 : index
    %352 = vector.load %arg6[%c30_159, %c0_160] : memref<32x128xf32, #tpu.memory_space<vmem>>, vector<2x128xf32>
    tpu.vector_store %arg6[%c30_159, %c0_160], %351 {strides = array<i32>} : memref<32x128xf32, #tpu.memory_space<vmem>>, vector<2x128xf32>,
    %cst_161 = arith.constant 0.000000e+00 : f32
    %353 = vector.broadcast %cst_161 : f32 to vector<4x32xf32>
    %cst_162 = arith.constant 0.000000e+00 : f32
    %354 = vector.broadcast %cst_162 : f32 to vector<4x32xf32>
    %355 = arith.truncf %353 : vector<4x32xf32> to vector<4x32xbf16>
    %cst_163 = arith.constant dense<0.000000e+00> : vector<4x256xf32>
    %356 = tpu.matmul %355, %14, %cst_163 {dimension_numbers = #tpu.dot_dimension_numbers<[1], [0], [0], [1], [0, 0, 1, 1], [], []>} : vector<4x32xbf16>, vector<32x256xbf16>, vector<4x256xf32> -> vector<4x256xf32>
    %357 = vector.extract_strided_slice %356 {offsets = [0, 0], sizes = [4, 128], strides = [1, 1]} : vector<4x256xf32> to vector<4x128xf32>
    %358 = vector.extract_strided_slice %356 {offsets = [0, 128], sizes = [4, 128], strides = [1, 1]} : vector<4x256xf32> to vector<4x128xf32>
    %359 = arith.select %2, %357, %358 : vector<4x128xi1>, vector<4x128xf32>
    %c0_164 = arith.constant 0 : index
    %c0_165 = arith.constant 0 : index
    %360 = vector.load %arg6[%c0_164, %c0_165] : memref<32x128xf32, #tpu.memory_space<vmem>>, vector<4x128xf32>
    %361 = arith.addf %360, %359 : vector<4x128xf32>
    %cst_166 = arith.constant 5.000000e-01 : f32
    %362 = vector.broadcast %cst_166 : f32 to vector<4x128xf32>
    %363 = arith.mulf %362, %361 : vector<4x128xf32>
    %364 = arith.select %8, %361, %363 : vector<4x128xi1>, vector<4x128xf32>
    %365 = math.tanh %364 : vector<4x128xf32>
    %cst_167 = arith.constant 5.000000e-01 : f32
    %366 = vector.broadcast %cst_167 : f32 to vector<4x128xf32>
    %367 = arith.mulf %366, %365 : vector<4x128xf32>
    %cst_168 = arith.constant 5.000000e-01 : f32
    %368 = vector.broadcast %cst_168 : f32 to vector<4x128xf32>
    %369 = arith.addf %367, %368 : vector<4x128xf32>
    %370 = arith.select %8, %365, %369 : vector<4x128xi1>, vector<4x128xf32>
    %371 = vector.extract_strided_slice %370 {offsets = [0, 0], sizes = [4, 32], strides = [1, 1]} : vector<4x128xf32> to vector<4x32xf32>
    %372 = vector.extract_strided_slice %370 {offsets = [0, 32], sizes = [4, 32], strides = [1, 1]} : vector<4x128xf32> to vector<4x32xf32>
    %373 = vector.extract_strided_slice %370 {offsets = [0, 64], sizes = [4, 32], strides = [1, 1]} : vector<4x128xf32> to vector<4x32xf32>
    %374 = vector.extract_strided_slice %370 {offsets = [0, 96], sizes = [4, 32], strides = [1, 1]} : vector<4x128xf32> to vector<4x32xf32>
    %375 = arith.mulf %372, %354 : vector<4x32xf32>
    %376 = arith.mulf %371, %373 : vector<4x32xf32>
    %377 = arith.addf %375, %376 : vector<4x32xf32>
    %378 = math.tanh %377 : vector<4x32xf32>
    %379 = arith.mulf %374, %378 : vector<4x32xf32>
    %380 = arith.truncf %379 : vector<4x32xf32> to vector<4x32xbf16>
    %cst_169 = arith.constant dense<0.000000e+00> : vector<4x256xf32>
    %381 = tpu.matmul %380, %14, %cst_169 {dimension_numbers = #tpu.dot_dimension_numbers<[1], [0], [0], [1], [0, 0, 1, 1], [], []>} : vector<4x32xbf16>, vector<32x256xbf16>, vector<4x256xf32> -> vector<4x256xf32>
    %382 = vector.extract_strided_slice %381 {offsets = [0, 0], sizes = [4, 128], strides = [1, 1]} : vector<4x256xf32> to vector<4x128xf32>
    %383 = vector.extract_strided_slice %381 {offsets = [0, 128], sizes = [4, 128], strides = [1, 1]} : vector<4x256xf32> to vector<4x128xf32>
    %384 = arith.select %2, %382, %383 : vector<4x128xi1>, vector<4x128xf32>
    %c4_170 = arith.constant 4 : index
    %c0_171 = arith.constant 0 : index
    %385 = vector.load %arg6[%c4_170, %c0_171] : memref<32x128xf32, #tpu.memory_space<vmem>>, vector<4x128xf32>
    %386 = arith.addf %385, %384 : vector<4x128xf32>
    %cst_172 = arith.constant 5.000000e-01 : f32
    %387 = vector.broadcast %cst_172 : f32 to vector<4x128xf32>
    %388 = arith.mulf %387, %386 : vector<4x128xf32>
    %389 = arith.select %8, %386, %388 : vector<4x128xi1>, vector<4x128xf32>
    %390 = math.tanh %389 : vector<4x128xf32>
    %cst_173 = arith.constant 5.000000e-01 : f32
    %391 = vector.broadcast %cst_173 : f32 to vector<4x128xf32>
    %392 = arith.mulf %391, %390 : vector<4x128xf32>
    %cst_174 = arith.constant 5.000000e-01 : f32
    %393 = vector.broadcast %cst_174 : f32 to vector<4x128xf32>
    %394 = arith.addf %392, %393 : vector<4x128xf32>
    %395 = arith.select %8, %390, %394 : vector<4x128xi1>, vector<4x128xf32>
    %396 = vector.extract_strided_slice %395 {offsets = [0, 0], sizes = [4, 32], strides = [1, 1]} : vector<4x128xf32> to vector<4x32xf32>
    %397 = vector.extract_strided_slice %395 {offsets = [0, 32], sizes = [4, 32], strides = [1, 1]} : vector<4x128xf32> to vector<4x32xf32>
    %398 = vector.extract_strided_slice %395 {offsets = [0, 64], sizes = [4, 32], strides = [1, 1]} : vector<4x128xf32> to vector<4x32xf32>
    %399 = vector.extract_strided_slice %395 {offsets = [0, 96], sizes = [4, 32], strides = [1, 1]} : vector<4x128xf32> to vector<4x32xf32>
    %400 = arith.mulf %397, %377 : vector<4x32xf32>
    %401 = arith.mulf %396, %398 : vector<4x32xf32>
    %402 = arith.addf %400, %401 : vector<4x32xf32>
    %403 = math.tanh %402 : vector<4x32xf32>
    %404 = arith.mulf %399, %403 : vector<4x32xf32>
    %405 = arith.truncf %404 : vector<4x32xf32> to vector<4x32xbf16>
    %cst_175 = arith.constant dense<0.000000e+00> : vector<4x256xf32>
    %406 = tpu.matmul %405, %14, %cst_175 {dimension_numbers = #tpu.dot_dimension_numbers<[1], [0], [0], [1], [0, 0, 1, 1], [], []>} : vector<4x32xbf16>, vector<32x256xbf16>, vector<4x256xf32> -> vector<4x256xf32>
    %407 = vector.extract_strided_slice %406 {offsets = [0, 0], sizes = [4, 128], strides = [1, 1]} : vector<4x256xf32> to vector<4x128xf32>
    %408 = vector.extract_strided_slice %406 {offsets = [0, 128], sizes = [4, 128], strides = [1, 1]} : vector<4x256xf32> to vector<4x128xf32>
    %409 = arith.select %2, %407, %408 : vector<4x128xi1>, vector<4x128xf32>
    %c8_176 = arith.constant 8 : index
    %c0_177 = arith.constant 0 : index
    %410 = vector.load %arg6[%c8_176, %c0_177] : memref<32x128xf32, #tpu.memory_space<vmem>>, vector<4x128xf32>
    %411 = arith.addf %410, %409 : vector<4x128xf32>
    %cst_178 = arith.constant 5.000000e-01 : f32
    %412 = vector.broadcast %cst_178 : f32 to vector<4x128xf32>
    %413 = arith.mulf %412, %411 : vector<4x128xf32>
    %414 = arith.select %8, %411, %413 : vector<4x128xi1>, vector<4x128xf32>
    %415 = math.tanh %414 : vector<4x128xf32>
    %cst_179 = arith.constant 5.000000e-01 : f32
    %416 = vector.broadcast %cst_179 : f32 to vector<4x128xf32>
    %417 = arith.mulf %416, %415 : vector<4x128xf32>
    %cst_180 = arith.constant 5.000000e-01 : f32
    %418 = vector.broadcast %cst_180 : f32 to vector<4x128xf32>
    %419 = arith.addf %417, %418 : vector<4x128xf32>
    %420 = arith.select %8, %415, %419 : vector<4x128xi1>, vector<4x128xf32>
    %421 = vector.extract_strided_slice %420 {offsets = [0, 0], sizes = [4, 32], strides = [1, 1]} : vector<4x128xf32> to vector<4x32xf32>
    %422 = vector.extract_strided_slice %420 {offsets = [0, 32], sizes = [4, 32], strides = [1, 1]} : vector<4x128xf32> to vector<4x32xf32>
    %423 = vector.extract_strided_slice %420 {offsets = [0, 64], sizes = [4, 32], strides = [1, 1]} : vector<4x128xf32> to vector<4x32xf32>
    %424 = vector.extract_strided_slice %420 {offsets = [0, 96], sizes = [4, 32], strides = [1, 1]} : vector<4x128xf32> to vector<4x32xf32>
    %425 = arith.mulf %422, %402 : vector<4x32xf32>
    %426 = arith.mulf %421, %423 : vector<4x32xf32>
    %427 = arith.addf %425, %426 : vector<4x32xf32>
    %428 = math.tanh %427 : vector<4x32xf32>
    %429 = arith.mulf %424, %428 : vector<4x32xf32>
    %430 = arith.truncf %429 : vector<4x32xf32> to vector<4x32xbf16>
    %cst_181 = arith.constant dense<0.000000e+00> : vector<4x256xf32>
    %431 = tpu.matmul %430, %14, %cst_181 {dimension_numbers = #tpu.dot_dimension_numbers<[1], [0], [0], [1], [0, 0, 1, 1], [], []>} : vector<4x32xbf16>, vector<32x256xbf16>, vector<4x256xf32> -> vector<4x256xf32>
    %432 = vector.extract_strided_slice %431 {offsets = [0, 0], sizes = [4, 128], strides = [1, 1]} : vector<4x256xf32> to vector<4x128xf32>
    %433 = vector.extract_strided_slice %431 {offsets = [0, 128], sizes = [4, 128], strides = [1, 1]} : vector<4x256xf32> to vector<4x128xf32>
    %434 = arith.select %2, %432, %433 : vector<4x128xi1>, vector<4x128xf32>
    %c12_182 = arith.constant 12 : index
    %c0_183 = arith.constant 0 : index
    %435 = vector.load %arg6[%c12_182, %c0_183] : memref<32x128xf32, #tpu.memory_space<vmem>>, vector<4x128xf32>
    %436 = arith.addf %435, %434 : vector<4x128xf32>
    %cst_184 = arith.constant 5.000000e-01 : f32
    %437 = vector.broadcast %cst_184 : f32 to vector<4x128xf32>
    %438 = arith.mulf %437, %436 : vector<4x128xf32>
    %439 = arith.select %8, %436, %438 : vector<4x128xi1>, vector<4x128xf32>
    %440 = math.tanh %439 : vector<4x128xf32>
    %cst_185 = arith.constant 5.000000e-01 : f32
    %441 = vector.broadcast %cst_185 : f32 to vector<4x128xf32>
    %442 = arith.mulf %441, %440 : vector<4x128xf32>
    %cst_186 = arith.constant 5.000000e-01 : f32
    %443 = vector.broadcast %cst_186 : f32 to vector<4x128xf32>
    %444 = arith.addf %442, %443 : vector<4x128xf32>
    %445 = arith.select %8, %440, %444 : vector<4x128xi1>, vector<4x128xf32>
    %446 = vector.extract_strided_slice %445 {offsets = [0, 0], sizes = [4, 32], strides = [1, 1]} : vector<4x128xf32> to vector<4x32xf32>
    %447 = vector.extract_strided_slice %445 {offsets = [0, 32], sizes = [4, 32], strides = [1, 1]} : vector<4x128xf32> to vector<4x32xf32>
    %448 = vector.extract_strided_slice %445 {offsets = [0, 64], sizes = [4, 32], strides = [1, 1]} : vector<4x128xf32> to vector<4x32xf32>
    %449 = vector.extract_strided_slice %445 {offsets = [0, 96], sizes = [4, 32], strides = [1, 1]} : vector<4x128xf32> to vector<4x32xf32>
    %450 = arith.mulf %447, %427 : vector<4x32xf32>
    %451 = arith.mulf %446, %448 : vector<4x32xf32>
    %452 = arith.addf %450, %451 : vector<4x32xf32>
    %453 = math.tanh %452 : vector<4x32xf32>
    %454 = arith.mulf %449, %453 : vector<4x32xf32>
    %455 = arith.truncf %454 : vector<4x32xf32> to vector<4x32xbf16>
    %cst_187 = arith.constant dense<0.000000e+00> : vector<4x256xf32>
    %456 = tpu.matmul %455, %14, %cst_187 {dimension_numbers = #tpu.dot_dimension_numbers<[1], [0], [0], [1], [0, 0, 1, 1], [], []>} : vector<4x32xbf16>, vector<32x256xbf16>, vector<4x256xf32> -> vector<4x256xf32>
    %457 = vector.extract_strided_slice %456 {offsets = [0, 0], sizes = [4, 128], strides = [1, 1]} : vector<4x256xf32> to vector<4x128xf32>
    %458 = vector.extract_strided_slice %456 {offsets = [0, 128], sizes = [4, 128], strides = [1, 1]} : vector<4x256xf32> to vector<4x128xf32>
    %459 = arith.select %2, %457, %458 : vector<4x128xi1>, vector<4x128xf32>
    %c16_188 = arith.constant 16 : index
    %c0_189 = arith.constant 0 : index
    %460 = vector.load %arg6[%c16_188, %c0_189] : memref<32x128xf32, #tpu.memory_space<vmem>>, vector<4x128xf32>
    %461 = arith.addf %460, %459 : vector<4x128xf32>
    %cst_190 = arith.constant 5.000000e-01 : f32
    %462 = vector.broadcast %cst_190 : f32 to vector<4x128xf32>
    %463 = arith.mulf %462, %461 : vector<4x128xf32>
    %464 = arith.select %8, %461, %463 : vector<4x128xi1>, vector<4x128xf32>
    %465 = math.tanh %464 : vector<4x128xf32>
    %cst_191 = arith.constant 5.000000e-01 : f32
    %466 = vector.broadcast %cst_191 : f32 to vector<4x128xf32>
    %467 = arith.mulf %466, %465 : vector<4x128xf32>
    %cst_192 = arith.constant 5.000000e-01 : f32
    %468 = vector.broadcast %cst_192 : f32 to vector<4x128xf32>
    %469 = arith.addf %467, %468 : vector<4x128xf32>
    %470 = arith.select %8, %465, %469 : vector<4x128xi1>, vector<4x128xf32>
    %471 = vector.extract_strided_slice %470 {offsets = [0, 0], sizes = [4, 32], strides = [1, 1]} : vector<4x128xf32> to vector<4x32xf32>
    %472 = vector.extract_strided_slice %470 {offsets = [0, 32], sizes = [4, 32], strides = [1, 1]} : vector<4x128xf32> to vector<4x32xf32>
    %473 = vector.extract_strided_slice %470 {offsets = [0, 64], sizes = [4, 32], strides = [1, 1]} : vector<4x128xf32> to vector<4x32xf32>
    %474 = vector.extract_strided_slice %470 {offsets = [0, 96], sizes = [4, 32], strides = [1, 1]} : vector<4x128xf32> to vector<4x32xf32>
    %475 = arith.mulf %472, %452 : vector<4x32xf32>
    %476 = arith.mulf %471, %473 : vector<4x32xf32>
    %477 = arith.addf %475, %476 : vector<4x32xf32>
    %478 = math.tanh %477 : vector<4x32xf32>
    %479 = arith.mulf %474, %478 : vector<4x32xf32>
    %480 = arith.truncf %479 : vector<4x32xf32> to vector<4x32xbf16>
    %cst_193 = arith.constant dense<0.000000e+00> : vector<4x256xf32>
    %481 = tpu.matmul %480, %14, %cst_193 {dimension_numbers = #tpu.dot_dimension_numbers<[1], [0], [0], [1], [0, 0, 1, 1], [], []>} : vector<4x32xbf16>, vector<32x256xbf16>, vector<4x256xf32> -> vector<4x256xf32>
    %482 = vector.extract_strided_slice %481 {offsets = [0, 0], sizes = [4, 128], strides = [1, 1]} : vector<4x256xf32> to vector<4x128xf32>
    %483 = vector.extract_strided_slice %481 {offsets = [0, 128], sizes = [4, 128], strides = [1, 1]} : vector<4x256xf32> to vector<4x128xf32>
    %484 = arith.select %2, %482, %483 : vector<4x128xi1>, vector<4x128xf32>
    %c20_194 = arith.constant 20 : index
    %c0_195 = arith.constant 0 : index
    %485 = vector.load %arg6[%c20_194, %c0_195] : memref<32x128xf32, #tpu.memory_space<vmem>>, vector<4x128xf32>
    %486 = arith.addf %485, %484 : vector<4x128xf32>
    %cst_196 = arith.constant 5.000000e-01 : f32
    %487 = vector.broadcast %cst_196 : f32 to vector<4x128xf32>
    %488 = arith.mulf %487, %486 : vector<4x128xf32>
    %489 = arith.select %8, %486, %488 : vector<4x128xi1>, vector<4x128xf32>
    %490 = math.tanh %489 : vector<4x128xf32>
    %cst_197 = arith.constant 5.000000e-01 : f32
    %491 = vector.broadcast %cst_197 : f32 to vector<4x128xf32>
    %492 = arith.mulf %491, %490 : vector<4x128xf32>
    %cst_198 = arith.constant 5.000000e-01 : f32
    %493 = vector.broadcast %cst_198 : f32 to vector<4x128xf32>
    %494 = arith.addf %492, %493 : vector<4x128xf32>
    %495 = arith.select %8, %490, %494 : vector<4x128xi1>, vector<4x128xf32>
    %496 = vector.extract_strided_slice %495 {offsets = [0, 0], sizes = [4, 32], strides = [1, 1]} : vector<4x128xf32> to vector<4x32xf32>
    %497 = vector.extract_strided_slice %495 {offsets = [0, 32], sizes = [4, 32], strides = [1, 1]} : vector<4x128xf32> to vector<4x32xf32>
    %498 = vector.extract_strided_slice %495 {offsets = [0, 64], sizes = [4, 32], strides = [1, 1]} : vector<4x128xf32> to vector<4x32xf32>
    %499 = vector.extract_strided_slice %495 {offsets = [0, 96], sizes = [4, 32], strides = [1, 1]} : vector<4x128xf32> to vector<4x32xf32>
    %500 = arith.mulf %497, %477 : vector<4x32xf32>
    %501 = arith.mulf %496, %498 : vector<4x32xf32>
    %502 = arith.addf %500, %501 : vector<4x32xf32>
    %503 = math.tanh %502 : vector<4x32xf32>
    %504 = arith.mulf %499, %503 : vector<4x32xf32>
    %505 = arith.truncf %504 : vector<4x32xf32> to vector<4x32xbf16>
    %cst_199 = arith.constant dense<0.000000e+00> : vector<4x256xf32>
    %506 = tpu.matmul %505, %14, %cst_199 {dimension_numbers = #tpu.dot_dimension_numbers<[1], [0], [0], [1], [0, 0, 1, 1], [], []>} : vector<4x32xbf16>, vector<32x256xbf16>, vector<4x256xf32> -> vector<4x256xf32>
    %507 = vector.extract_strided_slice %506 {offsets = [0, 0], sizes = [4, 128], strides = [1, 1]} : vector<4x256xf32> to vector<4x128xf32>
    %508 = vector.extract_strided_slice %506 {offsets = [0, 128], sizes = [4, 128], strides = [1, 1]} : vector<4x256xf32> to vector<4x128xf32>
    %509 = arith.select %2, %507, %508 : vector<4x128xi1>, vector<4x128xf32>
    %c24_200 = arith.constant 24 : index
    %c0_201 = arith.constant 0 : index
    %510 = vector.load %arg6[%c24_200, %c0_201] : memref<32x128xf32, #tpu.memory_space<vmem>>, vector<4x128xf32>
    %511 = arith.addf %510, %509 : vector<4x128xf32>
    %cst_202 = arith.constant 5.000000e-01 : f32
    %512 = vector.broadcast %cst_202 : f32 to vector<4x128xf32>
    %513 = arith.mulf %512, %511 : vector<4x128xf32>
    %514 = arith.select %8, %511, %513 : vector<4x128xi1>, vector<4x128xf32>
    %515 = math.tanh %514 : vector<4x128xf32>
    %cst_203 = arith.constant 5.000000e-01 : f32
    %516 = vector.broadcast %cst_203 : f32 to vector<4x128xf32>
    %517 = arith.mulf %516, %515 : vector<4x128xf32>
    %cst_204 = arith.constant 5.000000e-01 : f32
    %518 = vector.broadcast %cst_204 : f32 to vector<4x128xf32>
    %519 = arith.addf %517, %518 : vector<4x128xf32>
    %520 = arith.select %8, %515, %519 : vector<4x128xi1>, vector<4x128xf32>
    %521 = vector.extract_strided_slice %520 {offsets = [0, 0], sizes = [4, 32], strides = [1, 1]} : vector<4x128xf32> to vector<4x32xf32>
    %522 = vector.extract_strided_slice %520 {offsets = [0, 32], sizes = [4, 32], strides = [1, 1]} : vector<4x128xf32> to vector<4x32xf32>
    %523 = vector.extract_strided_slice %520 {offsets = [0, 64], sizes = [4, 32], strides = [1, 1]} : vector<4x128xf32> to vector<4x32xf32>
    %524 = vector.extract_strided_slice %520 {offsets = [0, 96], sizes = [4, 32], strides = [1, 1]} : vector<4x128xf32> to vector<4x32xf32>
    %525 = arith.mulf %522, %502 : vector<4x32xf32>
    %526 = arith.mulf %521, %523 : vector<4x32xf32>
    %527 = arith.addf %525, %526 : vector<4x32xf32>
    %528 = math.tanh %527 : vector<4x32xf32>
    %529 = arith.mulf %524, %528 : vector<4x32xf32>
    %530 = arith.truncf %529 : vector<4x32xf32> to vector<4x32xbf16>
    %cst_205 = arith.constant dense<0.000000e+00> : vector<4x256xf32>
    %531 = tpu.matmul %530, %14, %cst_205 {dimension_numbers = #tpu.dot_dimension_numbers<[1], [0], [0], [1], [0, 0, 1, 1], [], []>} : vector<4x32xbf16>, vector<32x256xbf16>, vector<4x256xf32> -> vector<4x256xf32>
    %532 = vector.extract_strided_slice %531 {offsets = [0, 0], sizes = [4, 128], strides = [1, 1]} : vector<4x256xf32> to vector<4x128xf32>
    %533 = vector.extract_strided_slice %531 {offsets = [0, 128], sizes = [4, 128], strides = [1, 1]} : vector<4x256xf32> to vector<4x128xf32>
    %534 = arith.select %2, %532, %533 : vector<4x128xi1>, vector<4x128xf32>
    %c28_206 = arith.constant 28 : index
    %c0_207 = arith.constant 0 : index
    %535 = vector.load %arg6[%c28_206, %c0_207] : memref<32x128xf32, #tpu.memory_space<vmem>>, vector<4x128xf32>
    %536 = arith.addf %535, %534 : vector<4x128xf32>
    %cst_208 = arith.constant 5.000000e-01 : f32
    %537 = vector.broadcast %cst_208 : f32 to vector<4x128xf32>
    %538 = arith.mulf %537, %536 : vector<4x128xf32>
    %539 = arith.select %8, %536, %538 : vector<4x128xi1>, vector<4x128xf32>
    %540 = math.tanh %539 : vector<4x128xf32>
    %cst_209 = arith.constant 5.000000e-01 : f32
    %541 = vector.broadcast %cst_209 : f32 to vector<4x128xf32>
    %542 = arith.mulf %541, %540 : vector<4x128xf32>
    %cst_210 = arith.constant 5.000000e-01 : f32
    %543 = vector.broadcast %cst_210 : f32 to vector<4x128xf32>
    %544 = arith.addf %542, %543 : vector<4x128xf32>
    %545 = arith.select %8, %540, %544 : vector<4x128xi1>, vector<4x128xf32>
    %546 = vector.extract_strided_slice %545 {offsets = [0, 0], sizes = [4, 32], strides = [1, 1]} : vector<4x128xf32> to vector<4x32xf32>
    %547 = vector.extract_strided_slice %545 {offsets = [0, 32], sizes = [4, 32], strides = [1, 1]} : vector<4x128xf32> to vector<4x32xf32>
    %548 = vector.extract_strided_slice %545 {offsets = [0, 64], sizes = [4, 32], strides = [1, 1]} : vector<4x128xf32> to vector<4x32xf32>
    %549 = vector.extract_strided_slice %545 {offsets = [0, 96], sizes = [4, 32], strides = [1, 1]} : vector<4x128xf32> to vector<4x32xf32>
    %550 = arith.mulf %547, %527 : vector<4x32xf32>
    %551 = arith.mulf %546, %548 : vector<4x32xf32>
    %552 = arith.addf %550, %551 : vector<4x32xf32>
    %553 = math.tanh %552 : vector<4x32xf32>
    %554 = arith.mulf %549, %553 : vector<4x32xf32>
    %c0_211 = arith.constant 0 : index
    %c0_212 = arith.constant 0 : index
    %555 = vector.load %arg8[%c0_211, %c0_212] : memref<4x256xf32, #tpu.memory_space<vmem>>, vector<4x32xf32>
    tpu.vector_store %arg8[%c0_211, %c0_212], %379 {strides = array<i32>} : memref<4x256xf32, #tpu.memory_space<vmem>>, vector<4x32xf32>,
    %c0_213 = arith.constant 0 : index
    %c32_214 = arith.constant 32 : index
    %556 = vector.load %arg8[%c0_213, %c32_214] : memref<4x256xf32, #tpu.memory_space<vmem>>, vector<4x32xf32>
    tpu.vector_store %arg8[%c0_213, %c32_214], %404 {strides = array<i32>} : memref<4x256xf32, #tpu.memory_space<vmem>>, vector<4x32xf32>,
    %c0_215 = arith.constant 0 : index
    %c64 = arith.constant 64 : index
    %557 = vector.load %arg8[%c0_215, %c64] : memref<4x256xf32, #tpu.memory_space<vmem>>, vector<4x32xf32>
    tpu.vector_store %arg8[%c0_215, %c64], %429 {strides = array<i32>} : memref<4x256xf32, #tpu.memory_space<vmem>>, vector<4x32xf32>,
    %c0_216 = arith.constant 0 : index
    %c96 = arith.constant 96 : index
    %558 = vector.load %arg8[%c0_216, %c96] : memref<4x256xf32, #tpu.memory_space<vmem>>, vector<4x32xf32>
    tpu.vector_store %arg8[%c0_216, %c96], %454 {strides = array<i32>} : memref<4x256xf32, #tpu.memory_space<vmem>>, vector<4x32xf32>,
    %c0_217 = arith.constant 0 : index
    %c128 = arith.constant 128 : index
    %559 = vector.load %arg8[%c0_217, %c128] : memref<4x256xf32, #tpu.memory_space<vmem>>, vector<4x32xf32>
    tpu.vector_store %arg8[%c0_217, %c128], %479 {strides = array<i32>} : memref<4x256xf32, #tpu.memory_space<vmem>>, vector<4x32xf32>,
    %c0_218 = arith.constant 0 : index
    %c160 = arith.constant 160 : index
    %560 = vector.load %arg8[%c0_218, %c160] : memref<4x256xf32, #tpu.memory_space<vmem>>, vector<4x32xf32>
    tpu.vector_store %arg8[%c0_218, %c160], %504 {strides = array<i32>} : memref<4x256xf32, #tpu.memory_space<vmem>>, vector<4x32xf32>,
    %c0_219 = arith.constant 0 : index
    %c192 = arith.constant 192 : index
    %561 = vector.load %arg8[%c0_219, %c192] : memref<4x256xf32, #tpu.memory_space<vmem>>, vector<4x32xf32>
    tpu.vector_store %arg8[%c0_219, %c192], %529 {strides = array<i32>} : memref<4x256xf32, #tpu.memory_space<vmem>>, vector<4x32xf32>,
    %c0_220 = arith.constant 0 : index
    %c224 = arith.constant 224 : index
    %562 = vector.load %arg8[%c0_220, %c224] : memref<4x256xf32, #tpu.memory_space<vmem>>, vector<4x32xf32>
    tpu.vector_store %arg8[%c0_220, %c224], %554 {strides = array<i32>} : memref<4x256xf32, #tpu.memory_space<vmem>>, vector<4x32xf32>,
    %c0_221 = arith.constant 0 : index
    %c0_222 = arith.constant 0 : index
    %563 = vector.load %arg8[%c0_221, %c0_222] : memref<4x256xf32, #tpu.memory_space<vmem>>, vector<4x256xf32>
    %c0_223 = arith.constant 0 : index
    %c0_224 = arith.constant 0 : index
    %564 = vector.load %arg3[%c0_223, %c0_224] : memref<257x32xf32, #tpu.memory_space<vmem>>, vector<256x32xf32>
    %cst_225 = arith.constant dense<0.000000e+00> : vector<4x32xf32>
    %565 = tpu.matmul %563, %564, %cst_225 {dimension_numbers = #tpu.dot_dimension_numbers<[1], [0], [0], [1], [0, 0, 1, 1], [], []>} : vector<4x256xf32>, vector<256x32xf32>, vector<4x32xf32> -> vector<4x32xf32>
    %566 = vector.extract_strided_slice %565 {offsets = [0, 0], sizes = [2, 16], strides = [1, 1]} : vector<4x32xf32> to vector<2x16xf32>
    %567 = vector.extract_strided_slice %565 {offsets = [2, 16], sizes = [2, 16], strides = [1, 1]} : vector<4x32xf32> to vector<2x16xf32>
    %568 = arith.addf %566, %567 : vector<2x16xf32>
    %c256 = arith.constant 256 : index
    %c0_226 = arith.constant 0 : index
    %569 = vector.load %arg3[%c256, %c0_226] : memref<257x32xf32, #tpu.memory_space<vmem>>, vector<1x16xf32>
    %570 = vector.broadcast %569 : vector<1x16xf32> to vector<2x16xf32>
    %571 = arith.addf %568, %570 : vector<2x16xf32>
    %c0_227 = arith.constant 0 : index
    %c0_228 = arith.constant 0 : index
    %572 = vector.load %arg4[%c0_227, %c0_228] : memref<2x16xf32, #tpu.memory_space<vmem>>, vector<2x16xf32>
    tpu.vector_store %arg4[%c0_227, %c0_228], %571 {strides = array<i32>} : memref<2x16xf32, #tpu.memory_space<vmem>>, vector<2x16xf32>,
    return
  }
}

</mosaic_0001>

<bundles_post_ra>
// kernel: srnn_forward.1
= control target key start
LH: loop header
LB: loop body
LE: loop exit
PB: predicated region body
PF: predicated region fallthrough
CT: control target
= control target key end

     0   :  { %vm77_vm0 = vcmask 1043456   ;;  %v1986_v2 = vmov 0.0   ;;  %vm70_vm1 = vcmask 31744   ;;  %v1987_v6 = vmov 0   ;;  %s2636_s0 = inlined_call_operand.vmem [shape: f32[16,4], index: 0, kind: input, shape index: {}]   ;;  %s2637_s1 = inlined_call_operand.vmem [shape: f32[88,256], index: 1, kind: input, shape index: {}]   ;;  %s2638_s2 = inlined_call_operand.vmem [shape: bf16[64,256], index: 2, kind: input, shape index: {}]   ;;  %s2639_s3 = inlined_call_operand.vmem [shape: f32[257,32], index: 3, kind: input, shape index: {}]   ;;  %s2640_s4 = inlined_call_operand.hbm [shape: f32[2,16], index: 4, kind: output, shape index: {}]  }
   0x1   :  { %v28_v0 = vld [vmem:[%s2637_s1 + $0x8] sm:$0xf]  ;;  %v27_v1 = vld [vmem:[%s2637_s1] sm:$0xf]  ;;  %148 = vmatprep.mubr.f32.mxu1 %v1986_v2  ;;  %v2031_v4 = vld [vmem:[%s2638_s2 + $0x4] ss:$8 sps:$4 sm:$0xff]   ;;  %323 = vmatprep.mubr.bf16.mxu0 %v1987_v6 }
   0x2   :  { %1766 = vmatprep.subr.msk.mxu1 %vm77_vm0, %v28_v0  ;;  %v57_v3 = vld [vmem:[%s2636_s0] sm:$0xff]  ;;  %v2043_v7 = vld [vmem:[%s2638_s2 + $0x14] ss:$8 sps:$4 sm:$0xff]   ;;  %v58_v8 = vld [vmem:[%s2636_s0 + $0x8] sm:$0xff]  ;;  %291 = vmatprep.subr.bf16.mxu0 %v2031_v4 }
   0x3   :  { %1767 = vmatpush1.msk.msra.mxu1 %vm77_vm0, %v27_v1  ;;  %v2036_v5 = vld [vmem:[%s2638_s2] ss:$8 sps:$4 sm:$0xff]   ;;  %v2053_v9 = vld [vmem:[%s2638_s2 + $0x10] ss:$8 sps:$4 sm:$0xff]  }
   0x4   :  { %1768 = vmatmul.mubr.msk.f32.vlgmr.msra.gmra.mrb[0].mxu1 %vm70_vm1, %v57_v3  ;;  %217 = vmatprep.subr.bf16.mxu1 %v2031_v4 }
   0x5   :  { %154 = vmatprep.mubr.f32.mxu1 %v1986_v2  ;;  %218 = vmatpush1.bf16.msra.mxu1 %v2036_v5 }
   0x6   :  { %219 = vmatprep.subr.bf16.mxu1 %v2043_v7  ;;  %292 = vmatpush1.bf16.msra.mxu0 %v2036_v5 }
   0x7   :  { %293 = vmatprep.subr.bf16.mxu0 %v2043_v7 }
   0x8   :  { %1769 = vmatmul.mubr.msk.f32.gmra.mrb[2].mxu1 %vm70_vm1, %v58_v8 }
   0x9   :  { %9 = vsyncpa [#allocation7], 0  ;;  %249 = vmatprep.mubr.bf16.mxu1 %v1987_v6  ;;  %220 = vmatpush1.bf16.msra.mxu1 %v2053_v9  ;;  %v19_v10 = vlaneseq  ;;  %v1764_v13 = vld [vmem:[%s2637_s1 + $0x10] ss:$8 sm:$0x3]  ;;  %s1988_s6 = smov 64  }
   0xa   :  { %294 = vmatpush1.bf16.msra.mxu0 %v2053_v9  ;;  %365 = vmatprep.subr.bf16.mxu1 %v2031_v4  ;;  %s1989_s7 = smov 32   ;;  %vm213_vm6 = vcmask 261120   ;;  %vm806_vm7 = vcmask 254976   ;;  %vm812_vm8 = vcmask 519426   ;;  %vm889_vm9 = vcmask 523264   ;;  %v1647_v33 = vld [vmem:[%s2639_s3 + $0x80] sm:$0xff] }
   0xb   :  { %439 = vmatprep.subr.bf16.mxu0 %v2031_v4  ;;  %v2072_v11 = vshrl.u32 %v19_v10, 7  ;;  %v23_v26 = vand.u32 127, %v19_v10  ;;  %vm1598_vm10 = vcmask 257024   ;;  %vm1604_vm11 = vcmask 519424  }
   0xc   :  { %250 = vmatmul.mubr.bf16.vlgmr.msra.gmra.mrb[4].mxu1 %v1987_v6  ;;  %vm1610_vm12 = vcmask 781824   ;;  %vm1612_vm13 = vcmask 1044224   ;;  %vm1748_vm14 = vcmask 123904  }
   0xd   :  { %366 = vmatpush1.bf16.msra.mxu1 %v2036_v5  ;;  %397 = vmatprep.mubr.bf16.mxu1 %v1987_v6  ;;  %v62_v12 = vsub.s32 0, %v2072_v11  ;;  %v66_v14 = vsub.s32 1, %v2072_v11  ;;  %vm21_vm2 = vcmp.lt.s32.totalorder %v2072_v11, 2  ;;  %vm24_vm3 = vcmp.ge.s32.totalorder %v23_v26, 64 }
   0xe   :  { %367 = vmatprep.subr.bf16.mxu1 %v2043_v7  ;;  %vm25_vm4 = vcmp.lt.s32.totalorder %v23_v26, 96 }
   0xf   :  { %v63_v15 = vrot.slane %v1764_v13, %v62_v12  ;;  %v67_v16 = vrot.slane %v1764_v13, %v66_v14  ;;  %vm2086_vm5 = vmand %vm24_vm3, %vm25_vm4 }
  0x11   :  { %368 = vmatpush1.bf16.msra.mxu1 %v2053_v9 }
  0x12   :  { %513 = vmatprep.subr.bf16.mxu1 %v2031_v4 }
  0xd7   :  { %v150_v17 = vpop.f32.mrb[0].mxu1 }
  0xd8   :  { %v151_v18 = vadd.f32 %v150_v17, %v63_v15  ;;  %v152_v19 = vpop.f32.mrb[1].mxu1 }
  0xd9   :  { %v153_v20 = vadd.f32 %v152_v19, %v67_v16 }
  0xda   :  { %161 = vst [vmem:[#allocation2] ss:$16 sps:$4 sm:$0x11] %v151_v18   ;;  %165 = vst [vmem:[#allocation2 + $0x3] ss:$16 sps:$4 sm:$0x22] %v151_v18  }
  0xdb   :  { %169 = vst [vmem:[#allocation2 + $0x6] ss:$16 sps:$4 sm:$0x44] %v151_v18   ;;  %173 = vst [vmem:[#allocation2 + $0x9] ss:$16 sps:$4 sm:$0x88] %v151_v18  }
  0xdc   :  { %162 = vst [vmem:[#allocation2 + $0xf] ss:$-16 sps:$4 sm:$0x88] %v153_v20   ;;  %166 = vst [vmem:[#allocation2 + $0x14] ss:$-16 sps:$4 sm:$0x44] %v153_v20  }
  0xdd   :  { %170 = vst [vmem:[#allocation2 + $0x19] ss:$-16 sps:$4 sm:$0x22] %v153_v20   ;;  %174 = vst [vmem:[#allocation2 + $0x1e] ss:$-16 sps:$4 sm:$0x11] %v153_v20  }
  0xde   :  { %v156_v21 = vpop.f32.mrb[2].mxu1 }
  0xdf   :  { %v157_v22 = vadd.f32 %v156_v21, %v63_v15  ;;  %v158_v23 = vpop.f32.mrb[3].mxu1 }
  0xe0   :  { %v159_v24 = vadd.f32 %v158_v23, %v67_v16  ;;  %v251_v25 = vpop.f32.mrb[4].mxu1 }
  0xe1   :  { %163 = vst [vmem:[#allocation2 + $0x1] ss:$16 sps:$4 sm:$0x11] %v157_v22   ;;  %167 = vst [vmem:[#allocation2 + $0x4] ss:$16 sps:$4 sm:$0x22] %v157_v22  }
  0xe2   :  { %171 = vst [vmem:[#allocation2 + $0x7] ss:$16 sps:$4 sm:$0x44] %v157_v22   ;;  %175 = vst [vmem:[#allocation2 + $0xa] ss:$16 sps:$4 sm:$0x88] %v157_v22  }
  0xe3   :  { %164 = vst [vmem:[#allocation2 + $0x10] ss:$-16 sps:$4 sm:$0x88] %v159_v24   ;;  %168 = vst [vmem:[#allocation2 + $0x15] ss:$-16 sps:$4 sm:$0x44] %v159_v24  }
  0xe4   :  { %172 = vst [vmem:[#allocation2 + $0x1a] ss:$-16 sps:$4 sm:$0x22] %v159_v24   ;;  %176 = vst [vmem:[#allocation2 + $0x1f] ss:$-16 sps:$4 sm:$0x11] %v159_v24  }
  0xe5   :  { %v253_v27 = vpop.f32.mrb[5].mxu1 }
  0xe6   :  { %v258_v28 = vsel %vm21_vm2, %v251_v25, %v253_v27  ;;  %v255_v29 = vpop.f32.mrb[6].mxu1 }
  0xe7   :  { %v256_v30 = vpop.f32.mrb[7].mxu1 }
  0xea   :  { %v259_v31 = vld [vmem:[#allocation2] sm:$0xf]  ;;  %v333_v53 = vld [vmem:[#allocation2 + $0x4] sm:$0xf] }
  0xeb   :  { %v260_v32 = vadd.f32 %v259_v31, %v258_v28  ;;  %v407_v21 = vld [vmem:[#allocation2 + $0x8] sm:$0xf] }
  0xed   :  { %v261_v34 = vmul.f32 0.5, %v260_v32 }
  0xef   :  { %v262_v35 = vsel %vm2086_vm5, %v260_v32, %v261_v34 }
  0xf0   :  { %1898 = vtanh.f32 %v262_v35 }
  0xfa   :  { %v1899_v36 = vpop.eup %1898 }
  0xfb   :  { %v264_v37 = vmul.f32 0.5, %v1899_v36 }
  0xfd   :  { %v265_v38 = vadd.f32 0.5, %v264_v37 }
  0xff   :  { %v266_v39 = vsel %vm2086_vm5, %v1899_v36, %v265_v38 }
 0x100   :  { %269 = vrot.lane.b32.xlu0 %v266_v39, %s1988_s6  ;;  %v267_v42 = vmul.f32 0.0, %v266_v39 }
 0x172   :  { %v270_v40 = vpop.permute.xlu0 %269 }
 0x173   :  { %v272_v41 = vmul.f32 %v270_v40, %v266_v39 }
 0x175   :  { %274 = vrot.lane.b32.xlu0 %v272_v41, %s1989_s7 }
 0x1e7   :  { %v275_v43 = vpop.permute.xlu0 %274 }
 0x1e8   :  { %v277_v44 = vadd.f32 %v275_v43, %v267_v42 }
 0x1ea   :  { %1900 = vtanh.f32 %v277_v44 }
 0x1f4   :  { %v1901_v45 = vpop.eup %1900 }
 0x1f5   :  { %280 = vrot.lane.b32.xlu1 %v1901_v45, %s1988_s6  ;;  %v481_v45 = vld [vmem:[#allocation2 + $0xc] sm:$0xf] }
 0x267   :  { %v281_v46 = vpop.permute.xlu1 %280 }
 0x268   :  { %v2097_v47 = vmul.f32 %v281_v46, %v266_v39 }
 0x26a   :  { %v284_v48 = vpack.c.bf16 %v2097_v47, %v2097_v47 }
 0x26c   :  { %286 = vrot.lane.b32.xlu1 %v284_v48, %s1989_s7 }
 0x2de   :  { %v287_v49 = vpop.permute.xlu1 %286 }
 0x2df   :  { %1774 = vmatmul.mubr.msk.bf16.vlgmr.msra.gmra.mrb[0].mxu0 %vm213_vm6, %v287_v49 }
 0x2e0   :  { %440 = vmatpush1.bf16.msra.mxu0 %v2036_v5  ;;  %471 = vmatprep.mubr.bf16.mxu0 %v1987_v6 }
 0x2e1   :  { %441 = vmatprep.subr.bf16.mxu0 %v2043_v7 }
 0x2e4   :  { %442 = vmatpush1.bf16.msra.mxu0 %v2053_v9 }
 0x2e5   :  { %587 = vmatprep.subr.bf16.mxu0 %v2031_v4 }
 0x3b2   :  { %v325_v50 = vpop.f32.mrb[0].mxu0 }
 0x3b3   :  { %v327_v51 = vpop.f32.mrb[1].mxu0 }
 0x3b4   :  { %v332_v52 = vsel %vm21_vm2, %v325_v50, %v327_v51  ;;  %v329_v54 = vpop.f32.mrb[2].mxu0 }
 0x3b5   :  { %v334_v55 = vadd.f32 %v333_v53, %v332_v52  ;;  %v330_v56 = vpop.f32.mrb[3].mxu0 }
 0x3b7   :  { %v335_v57 = vmul.f32 0.5, %v334_v55 }
 0x3b9   :  { %v336_v58 = vsel %vm2086_vm5, %v334_v55, %v335_v57 }
 0x3ba   :  { %1902 = vtanh.f32 %v336_v58 }
 0x3c4   :  { %v1903_v59 = vpop.eup %1902 }
 0x3c5   :  { %v338_v60 = vmul.f32 0.5, %v1903_v59 }
 0x3c7   :  { %v339_v61 = vadd.f32 0.5, %v338_v60 }
 0x3c9   :  { %v340_v62 = vsel %vm2086_vm5, %v1903_v59, %v339_v61 }
 0x3ca   :  { %343 = vrot.lane.b32.xlu0 %v340_v62, %s1988_s6  ;;  %v341_v1 = vmul.f32 %v340_v62, %v277_v44 }
 0x43c   :  { %v344_v63 = vpop.permute.xlu0 %343 }
 0x43d   :  { %v346_v0 = vmul.f32 %v344_v63, %v340_v62 }
 0x43f   :  { %348 = vrot.lane.b32.xlu1 %v346_v0, %s1989_s7 }
 0x4b1   :  { %v349_v3 = vpop.permute.xlu1 %348 }
 0x4b2   :  { %v351_v8 = vadd.f32 %v349_v3, %v341_v1 }
 0x4b4   :  { %1904 = vtanh.f32 %v351_v8 }
 0x4be   :  { %v1905_v10 = vpop.eup %1904 }
 0x4bf   :  { %354 = vrot.lane.b32.xlu0 %v1905_v10, %s1988_s6  ;;  %v555_v10 = vld [vmem:[#allocation2 + $0x10] sm:$0xf] }
 0x531   :  { %v355_v13 = vpop.permute.xlu0 %354 }
 0x532   :  { %v2117_v15 = vmul.f32 %v355_v13, %v340_v62 }
 0x534   :  { %v358_v16 = vpack.c.bf16 %v2117_v15, %v2117_v15 }
 0x536   :  { %360 = vrot.lane.b32.xlu1 %v358_v16, %s1989_s7 }
 0x5a8   :  { %v361_v17 = vpop.permute.xlu1 %360 }
 0x5a9   :  { %1775 = vmatmul.mubr.msk.bf16.vlgmr.msra.gmra.mrb[8].mxu1 %vm213_vm6, %v361_v17 }
 0x5aa   :  { %514 = vmatpush1.bf16.msra.mxu1 %v2036_v5  ;;  %545 = vmatprep.mubr.bf16.mxu1 %v1987_v6 }
 0x5ab   :  { %515 = vmatprep.subr.bf16.mxu1 %v2043_v7 }
 0x5ae   :  { %516 = vmatpush1.bf16.msra.mxu1 %v2053_v9 }
 0x5af   :  { %661 = vmatprep.subr.bf16.mxu1 %v2031_v4 }
 0x67c   :  { %v399_v18 = vpop.f32.mrb[8].mxu1 }
 0x67d   :  { %v401_v19 = vpop.f32.mrb[9].mxu1 }
 0x67e   :  { %v406_v20 = vsel %vm21_vm2, %v399_v18, %v401_v19  ;;  %v403_v22 = vpop.f32.mrb[10].mxu1 }
 0x67f   :  { %v408_v23 = vadd.f32 %v407_v21, %v406_v20  ;;  %v404_v24 = vpop.f32.mrb[11].mxu1 }
 0x681   :  { %v409_v25 = vmul.f32 0.5, %v408_v23 }
 0x683   :  { %v410_v26 = vsel %vm2086_vm5, %v408_v23, %v409_v25 }
 0x684   :  { %1906 = vtanh.f32 %v410_v26 }
 0x68e   :  { %v1907_v27 = vpop.eup %1906 }
 0x68f   :  { %v412_v28 = vmul.f32 0.5, %v1907_v27 }
 0x691   :  { %v413_v29 = vadd.f32 0.5, %v412_v28 }
 0x693   :  { %v414_v30 = vsel %vm2086_vm5, %v1907_v27, %v413_v29 }
 0x694   :  { %417 = vrot.lane.b32.xlu0 %v414_v30, %s1988_s6  ;;  %v415_v34 = vmul.f32 %v414_v30, %v351_v8 }
 0x706   :  { %v418_v31 = vpop.permute.xlu0 %417 }
 0x707   :  { %v420_v32 = vmul.f32 %v418_v31, %v414_v30 }
 0x709   :  { %422 = vrot.lane.b32.xlu1 %v420_v32, %s1989_s7 }
 0x77b   :  { %v423_v35 = vpop.permute.xlu1 %422 }
 0x77c   :  { %v425_v36 = vadd.f32 %v423_v35, %v415_v34 }
 0x77e   :  { %1908 = vtanh.f32 %v425_v36 }
 0x788   :  { %v1909_v37 = vpop.eup %1908 }
 0x789   :  { %428 = vrot.lane.b32.xlu0 %v1909_v37, %s1988_s6 }
 0x7fb   :  { %v429_v38 = vpop.permute.xlu0 %428 }
 0x7fc   :  { %v2137_v39 = vmul.f32 %v429_v38, %v414_v30  ;;  %v629_v38 = vld [vmem:[#allocation2 + $0x14] sm:$0xf] }
 0x7fe   :  { %v432_v40 = vpack.c.bf16 %v2137_v39, %v2137_v39 }
 0x800   :  { %434 = vrot.lane.b32.xlu1 %v432_v40, %s1989_s7 }
 0x872   :  { %v435_v41 = vpop.permute.xlu1 %434 }
 0x873   :  { %1776 = vmatmul.mubr.msk.bf16.vlgmr.msra.gmra.mrb[4].mxu0 %vm213_vm6, %v435_v41 }
 0x874   :  { %588 = vmatpush1.bf16.msra.mxu0 %v2036_v5  ;;  %619 = vmatprep.mubr.bf16.mxu0 %v1987_v6 }
 0x875   :  { %589 = vmatprep.subr.bf16.mxu0 %v2043_v7 }
 0x878   :  { %590 = vmatpush1.bf16.msra.mxu0 %v2053_v9 }
 0x879   :  { %735 = vmatprep.subr.bf16.mxu0 %v2031_v4 }
 0x946   :  { %v473_v42 = vpop.f32.mrb[4].mxu0 }
 0x947   :  { %v475_v43 = vpop.f32.mrb[5].mxu0 }
 0x948   :  { %v480_v44 = vsel %vm21_vm2, %v473_v42, %v475_v43  ;;  %v477_v46 = vpop.f32.mrb[6].mxu0 }
 0x949   :  { %v482_v48 = vadd.f32 %v481_v45, %v480_v44  ;;  %v478_v49 = vpop.f32.mrb[7].mxu0 }
 0x94b   :  { %v483_v50 = vmul.f32 0.5, %v482_v48 }
 0x94d   :  { %v484_v51 = vsel %vm2086_vm5, %v482_v48, %v483_v50 }
 0x94e   :  { %1910 = vtanh.f32 %v484_v51 }
 0x958   :  { %v1911_v52 = vpop.eup %1910 }
 0x959   :  { %v486_v53 = vmul.f32 0.5, %v1911_v52 }
 0x95b   :  { %v487_v54 = vadd.f32 0.5, %v486_v53 }
 0x95d   :  { %v488_v4 = vsel %vm2086_vm5, %v1911_v52, %v487_v54 }
 0x95e   :  { %491 = vrot.lane.b32.xlu0 %v488_v4, %s1988_s6  ;;  %v489_v57 = vmul.f32 %v488_v4, %v425_v36 }
 0x9d0   :  { %v492_v55 = vpop.permute.xlu0 %491 }
 0x9d1   :  { %v494_v56 = vmul.f32 %v492_v55, %v488_v4 }
 0x9d3   :  { %496 = vrot.lane.b32.xlu1 %v494_v56, %s1989_s7 }
 0xa45   :  { %v497_v58 = vpop.permute.xlu1 %496 }
 0xa46   :  { %v499_v59 = vadd.f32 %v497_v58, %v489_v57 }
 0xa48   :  { %1912 = vtanh.f32 %v499_v59 }
 0xa52   :  { %v1913_v60 = vpop.eup %1912 }
 0xa53   :  { %502 = vrot.lane.b32.xlu0 %v1913_v60, %s1988_s6 }
 0xac5   :  { %v503_v61 = vpop.permute.xlu0 %502 }
 0xac6   :  { %v2157_v62 = vmul.f32 %v503_v61, %v488_v4 }
 0xac8   :  { %v506_v63 = vpack.c.bf16 %v2157_v62, %v2157_v62 }
 0xaca   :  { %508 = vrot.lane.b32.xlu1 %v506_v63, %s1989_s7 }
 0xb3c   :  { %v509_v0 = vpop.permute.xlu1 %508 }
 0xb3d   :  { %1777 = vmatmul.mubr.msk.bf16.vlgmr.msra.gmra.mrb[12].mxu1 %vm213_vm6, %v509_v0 }
 0xb3e   :  { %662 = vmatpush1.bf16.msra.mxu1 %v2036_v5  ;;  %693 = vmatprep.mubr.bf16.mxu1 %v1987_v6 }
 0xb3f   :  { %663 = vmatprep.subr.bf16.mxu1 %v2043_v7 }
 0xb42   :  { %664 = vmatpush1.bf16.msra.mxu1 %v2053_v9 }
 0xc10   :  { %v547_v1 = vpop.f32.mrb[12].mxu1 }
 0xc11   :  { %v549_v3 = vpop.f32.mrb[13].mxu1 }
 0xc12   :  { %v554_v8 = vsel %vm21_vm2, %v547_v1, %v549_v3  ;;  %v551_v13 = vpop.f32.mrb[14].mxu1 }
 0xc13   :  { %v556_v16 = vadd.f32 %v555_v10, %v554_v8  ;;  %v552_v17 = vpop.f32.mrb[15].mxu1 }
 0xc15   :  { %v557_v18 = vmul.f32 0.5, %v556_v16 }
 0xc17   :  { %v558_v19 = vsel %vm2086_vm5, %v556_v16, %v557_v18 }
 0xc18   :  { %1914 = vtanh.f32 %v558_v19 }
 0xc22   :  { %v1915_v20 = vpop.eup %1914 }
 0xc23   :  { %v560_v21 = vmul.f32 0.5, %v1915_v20 }
 0xc25   :  { %v561_v22 = vadd.f32 0.5, %v560_v21 }
 0xc27   :  { %v562_v23 = vsel %vm2086_vm5, %v1915_v20, %v561_v22 }
 0xc28   :  { %565 = vrot.lane.b32.xlu0 %v562_v23, %s1988_s6  ;;  %v563_v26 = vmul.f32 %v562_v23, %v499_v59  ;;  %v703_v59 = vld [vmem:[#allocation2 + $0x18] sm:$0xf] }
 0xc9a   :  { %v566_v24 = vpop.permute.xlu0 %565 }
 0xc9b   :  { %v568_v25 = vmul.f32 %v566_v24, %v562_v23 }
 0xc9d   :  { %570 = vrot.lane.b32.xlu1 %v568_v25, %s1989_s7 }
 0xd0f   :  { %v571_v27 = vpop.permute.xlu1 %570 }
 0xd10   :  { %v573_v28 = vadd.f32 %v571_v27, %v563_v26 }
 0xd12   :  { %1916 = vtanh.f32 %v573_v28 }
 0xd1c   :  { %v1917_v29 = vpop.eup %1916 }
 0xd1d   :  { %576 = vrot.lane.b32.xlu0 %v1917_v29, %s1988_s6  ;;  %v777_v29 = vld [vmem:[#allocation2 + $0x1c] sm:$0xf] }
 0xd8f   :  { %v577_v30 = vpop.permute.xlu0 %576 }
 0xd90   :  { %v2176_v31 = vmul.f32 %v577_v30, %v562_v23 }
 0xd92   :  { %v580_v32 = vpack.c.bf16 %v2176_v31, %v2176_v31 }
 0xd94   :  { %582 = vrot.lane.b32.xlu1 %v580_v32, %s1989_s7 }
 0xe06   :  { %v583_v34 = vpop.permute.xlu1 %582 }
 0xe07   :  { %1778 = vmatmul.mubr.msk.bf16.vlgmr.msra.gmra.mrb[8].mxu0 %vm213_vm6, %v583_v34 }
 0xe08   :  { %736 = vmatpush1.bf16.msra.mxu0 %v2036_v5  ;;  %767 = vmatprep.mubr.bf16.mxu0 %v1987_v6 }
 0xe09   :  { %737 = vmatprep.subr.bf16.mxu0 %v2043_v7 }
 0xe0c   :  { %738 = vmatpush1.bf16.msra.mxu0 %v2053_v9 }
 0xeda   :  { %v621_v35 = vpop.f32.mrb[8].mxu0 }
 0xedb   :  { %v623_v36 = vpop.f32.mrb[9].mxu0 }
 0xedc   :  { %v628_v37 = vsel %vm21_vm2, %v621_v35, %v623_v36  ;;  %v625_v40 = vpop.f32.mrb[10].mxu0 }
 0xedd   :  { %v630_v41 = vadd.f32 %v629_v38, %v628_v37  ;;  %v626_v42 = vpop.f32.mrb[11].mxu0 }
 0xedf   :  { %v631_v43 = vmul.f32 0.5, %v630_v41 }
 0xee1   :  { %v632_v44 = vsel %vm2086_vm5, %v630_v41, %v631_v43 }
 0xee2   :  { %1918 = vtanh.f32 %v632_v44 }
 0xeec   :  { %v1919_v5 = vpop.eup %1918 }
 0xeed   :  { %v634_v45 = vmul.f32 0.5, %v1919_v5 }
 0xeef   :  { %v635_v46 = vadd.f32 0.5, %v634_v45 }
 0xef1   :  { %v636_v7 = vsel %vm2086_vm5, %v1919_v5, %v635_v46 }
 0xef2   :  { %639 = vrot.lane.b32.xlu0 %v636_v7, %s1988_s6  ;;  %v637_v49 = vmul.f32 %v636_v7, %v573_v28 }
 0xf64   :  { %v640_v9 = vpop.permute.xlu0 %639 }
 0xf65   :  { %v642_v48 = vmul.f32 %v640_v9, %v636_v7 }
 0xf67   :  { %644 = vrot.lane.b32.xlu1 %v642_v48, %s1989_s7 }
 0xfd9   :  { %v645_v50 = vpop.permute.xlu1 %644 }
 0xfda   :  { %v647_v51 = vadd.f32 %v645_v50, %v637_v49 }
 0xfdc   :  { %1920 = vtanh.f32 %v647_v51 }
 0xfe6   :  { %v1921_v52 = vpop.eup %1920 }
 0xfe7   :  { %650 = vrot.lane.b32.xlu0 %v1921_v52, %s1988_s6  ;;  %v32_v52 = vld [vmem:[%s2637_s1 + $0x28] sm:$0xff] }
0x1059   :  { %v651_v53 = vpop.permute.xlu0 %650 }
0x105a   :  { %v2195_v54 = vmul.f32 %v651_v53, %v636_v7  ;;  %v34_v53 = vld [vmem:[%s2637_s1 + $0x38] sm:$0xff] }
0x105c   :  { %v654_v4 = vpack.c.bf16 %v2195_v54, %v2195_v54 }
0x105e   :  { %656 = vrot.lane.b32.xlu1 %v654_v4, %s1989_s7  ;;  %v31_v4 = vld [vmem:[%s2637_s1 + $0x20] sm:$0xff] }
0x10d0   :  { %v657_v55 = vpop.permute.xlu1 %656 }
0x10d1   :  { %1779 = vmatmul.mubr.msk.bf16.vlgmr.msra.gmra.mrb[16].mxu1 %vm213_vm6, %v657_v55  ;;  %v1830_v55 = vpack.c.bf16 %v34_v53, %v32_v52 }
0x10d2   :  { %1189 = vmatprep.mubr.bf16.mxu1 %v1987_v6 }
0x10d3   :  { %1831 = vmatprep.subr.bf16.mxu0 %v1830_v55 }
0x11a4   :  { %v695_v56 = vpop.f32.mrb[16].mxu1 }
0x11a5   :  { %v697_v57 = vpop.f32.mrb[17].mxu1 }
0x11a6   :  { %v702_v58 = vsel %vm21_vm2, %v695_v56, %v697_v57  ;;  %v699_v60 = vpop.f32.mrb[18].mxu1  ;;  %v36_v56 = vld [vmem:[%s2637_s1 + $0x48] sm:$0xff]  ;;  %v38_v57 = vld [vmem:[%s2637_s1 + $0x58] sm:$0xff] }
0x11a7   :  { %v704_v61 = vadd.f32 %v703_v59, %v702_v58  ;;  %v700_v63 = vpop.f32.mrb[19].mxu1  ;;  %v1834_v59 = vpack.c.bf16 %v38_v57, %v36_v56  ;;  %v35_v60 = vld [vmem:[%s2637_s1 + $0x40] sm:$0xff] }
0x11a9   :  { %v705_v0 = vmul.f32 0.5, %v704_v61 }
0x11ab   :  { %v706_v1 = vsel %vm2086_vm5, %v704_v61, %v705_v0  ;;  %v37_v61 = vld [vmem:[%s2637_s1 + $0x50] sm:$0xff]  ;;  %v40_v0 = vld [vmem:[%s2637_s1 + $0x68] sm:$0xff] }
0x11ac   :  { %1922 = vtanh.f32 %v706_v1  ;;  %v1836_v63 = vpack.c.bf16 %v37_v61, %v35_v60  ;;  %v42_v1 = vld [vmem:[%s2637_s1 + $0x78] sm:$0xff] }
0x11b6   :  { %v1923_v3 = vpop.eup %1922 }
0x11b7   :  { %v708_v8 = vmul.f32 0.5, %v1923_v3 }
0x11b9   :  { %v709_v10 = vadd.f32 0.5, %v708_v8 }
0x11bb   :  { %v710_v13 = vsel %vm2086_vm5, %v1923_v3, %v709_v10  ;;  %v1838_v3 = vpack.c.bf16 %v42_v1, %v40_v0  ;;  %v46_v10 = vld [vmem:[%s2637_s1 + $0x98] sm:$0xff] }
0x11bc   :  { %713 = vrot.lane.b32.xlu0 %v710_v13, %s1988_s6  ;;  %v711_v18 = vmul.f32 %v710_v13, %v647_v51 }
0x122e   :  { %v714_v16 = vpop.permute.xlu0 %713 }
0x122f   :  { %v716_v17 = vmul.f32 %v714_v16, %v710_v13  ;;  %v43_v16 = vld [vmem:[%s2637_s1 + $0x80] sm:$0xff] }
0x1231   :  { %718 = vrot.lane.b32.xlu1 %v716_v17, %s1989_s7  ;;  %v45_v17 = vld [vmem:[%s2637_s1 + $0x90] sm:$0xff] }
0x12a3   :  { %v719_v19 = vpop.permute.xlu1 %718 }
0x12a4   :  { %v721_v20 = vadd.f32 %v719_v19, %v711_v18  ;;  %v1844_v18 = vpack.c.bf16 %v45_v17, %v43_v16  ;;  %v2307_v19 = vld [vmem:[%s2638_s2 + $0x24] ss:$8 sps:$4 sm:$0xff]  }
0x12a5   :  { %1157 = vmatprep.subr.bf16.mxu1 %v2307_v19 }
0x12a6   :  { %1924 = vtanh.f32 %v721_v20 }
0x12b0   :  { %v1925_v21 = vpop.eup %1924 }
0x12b1   :  { %724 = vrot.lane.b32.xlu0 %v1925_v21, %s1988_s6 }
0x1323   :  { %v725_v22 = vpop.permute.xlu0 %724 }
0x1324   :  { %v727_v23 = vmul.f32 %v725_v22, %v710_v13 }
0x1326   :  { %v728_v24 = vpack.c.bf16 %v727_v23, %v727_v23 }
0x1328   :  { %730 = vrot.lane.b32.xlu1 %v728_v24, %s1989_s7  ;;  %v2328_v24 = vld [vmem:[%s2638_s2 + $0x30] ss:$8 sps:$4 sm:$0xff]  }
0x139a   :  { %v731_v25 = vpop.permute.xlu1 %730 }
0x139b   :  { %1780 = vmatmul.mubr.msk.bf16.vlgmr.msra.gmra.mrb[12].mxu0 %vm213_vm6, %v731_v25 }
0x139c   :  { %960 = vmatprep.mubr.f32.mxu0 %v1986_v2 }
0x146e   :  { %v769_v26 = vpop.f32.mrb[12].mxu0 }
0x146f   :  { %v771_v27 = vpop.f32.mrb[13].mxu0 }
0x1470   :  { %v776_v28 = vsel %vm21_vm2, %v769_v26, %v771_v27  ;;  %v773_v30 = vpop.f32.mrb[14].mxu0 }
0x1471   :  { %v778_v32 = vadd.f32 %v777_v29, %v776_v28  ;;  %v774_v34 = vpop.f32.mrb[15].mxu0 }
0x1473   :  { %v779_v35 = vmul.f32 0.5, %v778_v32 }
0x1475   :  { %v780_v36 = vsel %vm2086_vm5, %v778_v32, %v779_v35 }
0x1476   :  { %1926 = vtanh.f32 %v780_v36 }
0x1480   :  { %v1927_v37 = vpop.eup %1926 }
0x1481   :  { %v782_v38 = vmul.f32 0.5, %v1927_v37 }
0x1483   :  { %v783_v40 = vadd.f32 0.5, %v782_v38 }
0x1485   :  { %v2220_v41 = vsel %vm2086_vm5, %v1927_v37, %v783_v40 }
0x1486   :  { %787 = vrot.lane.b32.xlu0 %v2220_v41, %s1988_s6  ;;  %v785_v44 = vmul.f32 %v2220_v41, %v721_v20  ;;  %v2312_v20 = vld [vmem:[%s2638_s2 + $0x20] ss:$8 sps:$4 sm:$0xff]  }
0x1487   :  { %1158 = vmatpush1.bf16.msra.mxu1 %v2312_v20 }
0x14f8   :  { %v788_v42 = vpop.permute.xlu0 %787 }
0x14f9   :  { %v790_v43 = vmul.f32 %v788_v42, %v2220_v41 }
0x14fb   :  { %792 = vrot.lane.b32.xlu1 %v790_v43, %s1989_s7 }
0x14ff   :  { %803 = vrot.lane.b32.xlu1 %v2097_v47, %s1989_s7 }
0x1503   :  { %825 = vrot.lane.b32.xlu1 %v2137_v39, %s1989_s7 }
0x1507   :  { %830 = vrot.lane.b32.xlu1 %v2195_v54, %s1988_s6 }
0x150b   :  { %844 = vrot.lane.b32.xlu1 %v2176_v31, %s1989_s7 }
0x150f   :  { %860 = vrot.lane.b32.xlu1 %v727_v23, %s1989_s7 }
0x1513   :  { %848 = vrot.lane.b32.xlu1 %v2157_v62, %s1988_s6 }
0x156d   :  { %v793_v5 = vpop.permute.xlu1 %792 }
0x156e   :  { %v795_v45 = vadd.f32 %v793_v5, %v785_v44 }
0x1570   :  { %1928 = vtanh.f32 %v795_v45 }
0x1571   :  { %v804_v46 = vpop.permute.xlu1 %803 }
0x1572   :  { %807 = vst.msk [vmem:[#allocation4] sm:$0x3] %vm806_vm7, %v804_v46 }
0x1575   :  { %v826_v7 = vpop.permute.xlu1 %825 }
0x1576   :  { %828 = vst.msk [vmem:[#allocation4 + $0x4] sm:$0x3] %vm806_vm7, %v826_v7 }
0x1579   :  { %v831_v9 = vpop.permute.xlu1 %830 }
0x157a   :  { %v1929_v48 = vpop.eup %1928  ;;  %833 = vst.msk [vmem:[#allocation4 + $0x2] sm:$0xc] %vm812_vm8, %v831_v9 }
0x157b   :  { %798 = vrot.lane.b32.xlu0 %v1929_v48, %s1988_s6 }
0x157d   :  { %v845_v49 = vpop.permute.xlu1 %844 }
0x157e   :  { %847 = vst.msk [vmem:[#allocation4 + $0x8] sm:$0x3] %vm806_vm7, %v845_v49 }
0x157f   :  { %815 = vrot.lane.b32.xlu0 %v2117_v15, %s1989_s7 }
0x1581   :  { %v861_v50 = vpop.permute.xlu1 %860 }
0x1582   :  { %863 = vst.msk [vmem:[#allocation4 + $0xc] sm:$0x3] %vm806_vm7, %v861_v50 }
0x1583   :  { %835 = vrot.lane.b32.xlu0 %v2157_v62, %s1989_s7  ;;  %v33_v62 = vld [vmem:[%s2637_s1 + $0x30] sm:$0xff] }
0x1584   :  { %v1832_v58 = vpack.c.bf16 %v33_v62, %v31_v4 }
0x1585   :  { %v849_v51 = vpop.permute.xlu1 %848 }
0x1586   :  { %851 = vst.msk [vmem:[#allocation4 + $0x6] sm:$0xc] %vm812_vm8, %v849_v51  ;;  %1833 = vmatpush1.bf16.msra.mxu0 %v1832_v58 }
0x1587   :  { %820 = vrot.lane.b32.xlu0 %v727_v23, %s1988_s6  ;;  %1835 = vmatprep.subr.bf16.mxu0 %v1834_v59  ;;  %v2321_v23 = vld [vmem:[%s2638_s2 + $0x34] ss:$8 sps:$4 sm:$0xff]  }
0x1588   :  { %1159 = vmatprep.subr.bf16.mxu1 %v2321_v23 }
0x1589   :  { %1160 = vmatpush1.bf16.msra.mxu1 %v2328_v24 }
0x158a   :  { %1837 = vmatpush1.bf16.msra.mxu0 %v1836_v63  ;;  %1305 = vmatprep.subr.bf16.mxu1 %v2307_v19 }
0x158b   :  { %840 = vrot.lane.b32.xlu0 %v2176_v31, %s1988_s6  ;;  %v39_v31 = vld [vmem:[%s2637_s1 + $0x60] sm:$0xff]  ;;  %1839 = vmatprep.subr.bf16.mxu0 %v1838_v3 }
0x158f   :  { %852 = vrot.lane.b32.xlu0 %v2195_v54, %s1989_s7  ;;  %v41_v54 = vld [vmem:[%s2637_s1 + $0x70] sm:$0xff] }
0x1590   :  { %v1840_v8 = vpack.c.bf16 %v41_v54, %v39_v31 }
0x1592   :  { %1841 = vmatpush1.bf16.msra.mxu0 %v1840_v8 }
0x1593   :  { %856 = vrot.lane.b32.xlu0 %v2137_v39, %s1988_s6  ;;  %v44_v39 = vld [vmem:[%s2637_s1 + $0x88] sm:$0xff] }
0x1594   :  { %v1842_v13 = vpack.c.bf16 %v46_v10, %v44_v39 }
0x1596   :  { %1843 = vmatprep.subr.bf16.mxu0 %v1842_v13 }
0x1597   :  { %1845 = vmatpush1.bf16.msra.mxu0 %v1844_v18 }
0x1598   :  { %1009 = vmatprep.subr.bf16.mxu0 %v2307_v19 }
0x15ed   :  { %v799_v21 = vpop.permute.xlu0 %798 }
0x15ee   :  { %v801_v22 = vmul.f32 %v799_v21, %v2220_v41 }
0x15f0   :  { %868 = vrot.lane.b32.xlu0 %v801_v22, %s1989_s7  ;;  %809 = vrot.lane.b32.xlu1 %v801_v22, %s1988_s6 }
0x15f1   :  { %v816_v25 = vpop.permute.xlu0 %815 }
0x15f2   :  { %818 = vst.msk [vmem:[#allocation4 + $0x2] sm:$0x3] %vm806_vm7, %v816_v25 }
0x15f4   :  { %872 = vrot.lane.b32.xlu0 %v2097_v47, %s1988_s6  ;;  %864 = vrot.lane.b32.xlu1 %v2117_v15, %s1988_s6 }
0x15f5   :  { %v836_v26 = vpop.permute.xlu0 %835 }
0x15f6   :  { %838 = vst.msk [vmem:[#allocation4 + $0x6] sm:$0x3] %vm806_vm7, %v836_v26 }
0x15f9   :  { %v821_v27 = vpop.permute.xlu0 %820 }
0x15fa   :  { %823 = vst.msk [vmem:[#allocation4] sm:$0xc] %vm812_vm8, %v821_v27 }
0x15fd   :  { %v841_v28 = vpop.permute.xlu0 %840 }
0x15fe   :  { %843 = vst.msk [vmem:[#allocation4 + $0x4] sm:$0xc] %vm812_vm8, %v841_v28 }
0x1601   :  { %v853_v29 = vpop.permute.xlu0 %852 }
0x1602   :  { %855 = vst.msk [vmem:[#allocation4 + $0xa] sm:$0x3] %vm806_vm7, %v853_v29 }
0x1605   :  { %v857_v30 = vpop.permute.xlu0 %856 }
0x1606   :  { %859 = vst.msk [vmem:[#allocation4 + $0x8] sm:$0xc] %vm812_vm8, %v857_v30 }
0x1662   :  { %v810_v32 = vpop.permute.xlu1 %809  ;;  %v869_v47 = vpop.permute.xlu0 %868 }
0x1663   :  { %813 = vst.msk [vmem:[#allocation4 - $0x2] sm:$0xc] %vm812_vm8, %v810_v32 }
0x1664   :  { %871 = vst.msk [vmem:[#allocation4 + $0xe] sm:$0x3] %vm806_vm7, %v869_v47 }
0x1666   :  { %v865_v15 = vpop.permute.xlu1 %864  ;;  %v873_v34 = vpop.permute.xlu0 %872 }
0x1667   :  { %867 = vst.msk [vmem:[#allocation4 + $0xa] sm:$0xc] %vm812_vm8, %v865_v15  ;;  %875 = vst.msk [vmem:[#allocation4 + $0xc] sm:$0xc] %vm812_vm8, %v873_v34 }
0x166a   :  { %v876_v35 = vld [vmem:[#allocation4] sm:$0xff] }
0x166b   :  { %1781 = vmatmul.mubr.msk.f32.vlgmr.msra.gmra.mrb[16].mxu0 %vm889_vm9, %v876_v35 }
0x166c   :  { %966 = vmatprep.mubr.f32.mxu0 %v1986_v2  ;;  %1010 = vmatpush1.bf16.msra.mxu0 %v2312_v20  ;;  %v1765_v2 = vld [vmem:[%s2637_s1 + $0xa0] ss:$8 sm:$0x3]  ;;  %s1990_s1 = smov 96  }
0x166d   :  { %1011 = vmatprep.subr.bf16.mxu0 %v2321_v23  ;;  %v882_v37 = vrot.slane %v1765_v2, %v62_v12  ;;  %v886_v38 = vrot.slane %v1765_v2, %v66_v14 }
0x166e   :  { %v877_v36 = vld [vmem:[#allocation4 + $0x8] sm:$0xff] }
0x166f   :  { %1782 = vmatmul.mubr.msk.f32.gmra.mrb[18].mxu0 %vm889_vm9, %v877_v36 }
0x1670   :  { %1012 = vmatpush1.bf16.msra.mxu0 %v2328_v24  ;;  %1041 = vmatprep.mubr.bf16.mxu0 %v1987_v6 }
0x1671   :  { %1083 = vmatprep.subr.bf16.mxu0 %v2307_v19 }
0x1673   :  { %1042 = vmatmul.mubr.bf16.vlgmr.msra.gmra.mrb[20].mxu0 %v1987_v6 }
0x1674   :  { %1084 = vmatpush1.bf16.msra.mxu0 %v2312_v20  ;;  %1115 = vmatprep.mubr.bf16.mxu0 %v1987_v6 }
0x1675   :  { %1085 = vmatprep.subr.bf16.mxu0 %v2321_v23 }
0x1678   :  { %1086 = vmatpush1.bf16.msra.mxu0 %v2328_v24 }
0x1679   :  { %1231 = vmatprep.subr.bf16.mxu0 %v2307_v19 }
0x173e   :  { %v962_v40 = vpop.f32.mrb[16].mxu0 }
0x173f   :  { %v963_v41 = vadd.f32 %v962_v40, %v882_v37  ;;  %v964_v42 = vpop.f32.mrb[17].mxu0 }
0x1740   :  { %v965_v43 = vadd.f32 %v964_v42, %v886_v38 }
0x1741   :  { %973 = vst [vmem:[#allocation3] ss:$8 sps:$4 sm:$0x33] %v963_v41   ;;  %975 = vst [vmem:[#allocation3 + $0x2] ss:$8 sps:$4 sm:$0xcc] %v963_v41  }
0x1742   :  { %982 = vst [vmem:[#allocation3 + $0x18] ss:$-8 sps:$4 sm:$0xcc] %v965_v43   ;;  %984 = vst [vmem:[#allocation3 + $0x1e] ss:$-8 sps:$4 sm:$0x33] %v965_v43  }
0x1743   :  { %v968_v44 = vpop.f32.mrb[18].mxu0 }
0x1744   :  { %v969_v5 = vadd.f32 %v968_v44, %v882_v37  ;;  %v970_v45 = vpop.f32.mrb[19].mxu0 }
0x1745   :  { %v971_v46 = vadd.f32 %v970_v45, %v886_v38 }
0x1746   :  { %981 = vst [vmem:[#allocation3 + $0x10] ss:$8 sps:$4 sm:$0x33] %v969_v5   ;;  %983 = vst [vmem:[#allocation3 + $0x12] ss:$8 sps:$4 sm:$0xcc] %v969_v5  }
0x1747   :  { %974 = vst [vmem:[#allocation3 + $0x8] ss:$-8 sps:$4 sm:$0xcc] %v971_v46   ;;  %976 = vst [vmem:[#allocation3 + $0xe] ss:$-8 sps:$4 sm:$0x33] %v971_v46  }
0x1748   :  { %v1043_v12 = vpop.f32.mrb[20].mxu0 }
0x1749   :  { %v1045_v7 = vpop.f32.mrb[21].mxu0 }
0x174a   :  { %v1050_v14 = vsel %vm21_vm2, %v1043_v12, %v1045_v7  ;;  %v1047_v9 = vpop.f32.mrb[22].mxu0 }
0x174b   :  { %v1048_v48 = vpop.f32.mrb[23].mxu0 }
0x174e   :  { %v1051_v49 = vld [vmem:[#allocation3] sm:$0xf]  ;;  %v1125_v39 = vld [vmem:[#allocation3 + $0x4] sm:$0xf]  ;;  %v1199_v40 = vld [vmem:[#allocation3 + $0x8] sm:$0xf] }
0x174f   :  { %v1052_v50 = vadd.f32 %v1051_v49, %v1050_v14 }
0x1751   :  { %v1053_v51 = vmul.f32 0.5, %v1052_v50 }
0x1753   :  { %v1054_v52 = vsel %vm2086_vm5, %v1052_v50, %v1053_v51 }
0x1754   :  { %1930 = vtanh.f32 %v1054_v52 }
0x175e   :  { %v1931_v53 = vpop.eup %1930 }
0x175f   :  { %v1056_v4 = vmul.f32 0.5, %v1931_v53 }
0x1761   :  { %v1057_v55 = vadd.f32 0.5, %v1056_v4 }
0x1763   :  { %v1058_v62 = vsel %vm2086_vm5, %v1931_v53, %v1057_v55 }
0x1764   :  { %1061 = vrot.lane.b32.xlu1 %v1058_v62, %s1988_s6  ;;  %v1059_v58 = vmul.f32 0.0, %v1058_v62 }
0x17d6   :  { %v1062_v56 = vpop.permute.xlu1 %1061 }
0x17d7   :  { %v1064_v57 = vmul.f32 %v1062_v56, %v1058_v62 }
0x17d9   :  { %1066 = vrot.lane.b32.xlu0 %v1064_v57, %s1989_s7 }
0x184b   :  { %v1067_v59 = vpop.permute.xlu0 %1066 }
0x184c   :  { %v1069_v60 = vadd.f32 %v1067_v59, %v1059_v58  ;;  %v1273_v58 = vld [vmem:[#allocation3 + $0xc] sm:$0xf] }
0x184e   :  { %1932 = vtanh.f32 %v1069_v60 }
0x1858   :  { %v1933_v61 = vpop.eup %1932 }
0x1859   :  { %1072 = vrot.lane.b32.xlu1 %v1933_v61, %s1988_s6 }
0x18cb   :  { %v1073_v63 = vpop.permute.xlu1 %1072 }
0x18cc   :  { %v2375_v0 = vmul.f32 %v1073_v63, %v1058_v62 }
0x18ce   :  { %v1076_v1 = vpack.c.bf16 %v2375_v0, %v2375_v0 }
0x18d0   :  { %1078 = vrot.lane.b32.xlu0 %v1076_v1, %s1989_s7 }
0x1942   :  { %v1079_v3 = vpop.permute.xlu0 %1078 }
0x1943   :  { %1787 = vmatmul.mubr.msk.bf16.vlgmr.msra.gmra.mrb[24].mxu0 %vm213_vm6, %v1079_v3 }
0x1944   :  { %1232 = vmatpush1.bf16.msra.mxu0 %v2312_v20  ;;  %1263 = vmatprep.mubr.bf16.mxu0 %v1987_v6 }
0x1945   :  { %1233 = vmatprep.subr.bf16.mxu0 %v2321_v23 }
0x1948   :  { %1234 = vmatpush1.bf16.msra.mxu0 %v2328_v24 }
0x1949   :  { %1379 = vmatprep.subr.bf16.mxu0 %v2307_v19 }
0x1a16   :  { %v1117_v31 = vpop.f32.mrb[24].mxu0 }
0x1a17   :  { %v1119_v54 = vpop.f32.mrb[25].mxu0 }
0x1a18   :  { %v1124_v8 = vsel %vm21_vm2, %v1117_v31, %v1119_v54  ;;  %v1121_v10 = vpop.f32.mrb[26].mxu0 }
0x1a19   :  { %v1126_v13 = vadd.f32 %v1125_v39, %v1124_v8  ;;  %v1122_v16 = vpop.f32.mrb[27].mxu0 }
0x1a1b   :  { %v1127_v17 = vmul.f32 0.5, %v1126_v13 }
0x1a1d   :  { %v1128_v18 = vsel %vm2086_vm5, %v1126_v13, %v1127_v17 }
0x1a1e   :  { %1934 = vtanh.f32 %v1128_v18 }
0x1a28   :  { %v1935_v21 = vpop.eup %1934 }
0x1a29   :  { %v1130_v22 = vmul.f32 0.5, %v1935_v21 }
0x1a2b   :  { %v1131_v25 = vadd.f32 0.5, %v1130_v22 }
0x1a2d   :  { %v1132_v26 = vsel %vm2086_vm5, %v1935_v21, %v1131_v25 }
0x1a2e   :  { %1135 = vrot.lane.b32.xlu1 %v1132_v26, %s1988_s6  ;;  %v1133_v29 = vmul.f32 %v1132_v26, %v1069_v60 }
0x1aa0   :  { %v1136_v27 = vpop.permute.xlu1 %1135 }
0x1aa1   :  { %v1138_v28 = vmul.f32 %v1136_v27, %v1132_v26 }
0x1aa3   :  { %1140 = vrot.lane.b32.xlu0 %v1138_v28, %s1989_s7 }
0x1b15   :  { %v1141_v30 = vpop.permute.xlu0 %1140 }
0x1b16   :  { %v1143_v32 = vadd.f32 %v1141_v30, %v1133_v29  ;;  %v1347_v29 = vld [vmem:[#allocation3 + $0x10] sm:$0xf] }
0x1b18   :  { %1936 = vtanh.f32 %v1143_v32 }
0x1b22   :  { %v1937_v47 = vpop.eup %1936 }
0x1b23   :  { %1146 = vrot.lane.b32.xlu1 %v1937_v47, %s1988_s6 }
0x1b95   :  { %v1147_v15 = vpop.permute.xlu1 %1146 }
0x1b96   :  { %v2395_v34 = vmul.f32 %v1147_v15, %v1132_v26 }
0x1b98   :  { %v1150_v35 = vpack.c.bf16 %v2395_v34, %v2395_v34 }
0x1b9a   :  { %1152 = vrot.lane.b32.xlu0 %v1150_v35, %s1989_s7 }
0x1c0c   :  { %v1153_v36 = vpop.permute.xlu0 %1152 }
0x1c0d   :  { %1788 = vmatmul.mubr.msk.bf16.vlgmr.msra.gmra.mrb[20].mxu1 %vm213_vm6, %v1153_v36 }
0x1c0e   :  { %1306 = vmatpush1.bf16.msra.mxu1 %v2312_v20  ;;  %1337 = vmatprep.mubr.bf16.mxu1 %v1987_v6 }
0x1c0f   :  { %1307 = vmatprep.subr.bf16.mxu1 %v2321_v23 }
0x1c12   :  { %1308 = vmatpush1.bf16.msra.mxu1 %v2328_v24 }
0x1c13   :  { %1453 = vmatprep.subr.bf16.mxu1 %v2307_v19 }
0x1ce0   :  { %v1191_v2 = vpop.f32.mrb[20].mxu1 }
0x1ce1   :  { %v1193_v37 = vpop.f32.mrb[21].mxu1 }
0x1ce2   :  { %v1198_v38 = vsel %vm21_vm2, %v1191_v2, %v1193_v37  ;;  %v1195_v41 = vpop.f32.mrb[22].mxu1 }
0x1ce3   :  { %v1200_v42 = vadd.f32 %v1199_v40, %v1198_v38  ;;  %v1196_v43 = vpop.f32.mrb[23].mxu1 }
0x1ce5   :  { %v1201_v44 = vmul.f32 0.5, %v1200_v42 }
0x1ce7   :  { %v1202_v5 = vsel %vm2086_vm5, %v1200_v42, %v1201_v44 }
0x1ce8   :  { %1938 = vtanh.f32 %v1202_v5 }
0x1cf2   :  { %v1939_v45 = vpop.eup %1938 }
0x1cf3   :  { %v1204_v46 = vmul.f32 0.5, %v1939_v45 }
0x1cf5   :  { %v1205_v12 = vadd.f32 0.5, %v1204_v46 }
0x1cf7   :  { %v1206_v7 = vsel %vm2086_vm5, %v1939_v45, %v1205_v12 }
0x1cf8   :  { %1209 = vrot.lane.b32.xlu1 %v1206_v7, %s1988_s6  ;;  %v1207_v48 = vmul.f32 %v1206_v7, %v1143_v32 }
0x1d6a   :  { %v1210_v14 = vpop.permute.xlu1 %1209 }
0x1d6b   :  { %v1212_v9 = vmul.f32 %v1210_v14, %v1206_v7 }
0x1d6d   :  { %1214 = vrot.lane.b32.xlu0 %v1212_v9, %s1989_s7 }
0x1ddf   :  { %v1215_v49 = vpop.permute.xlu0 %1214 }
0x1de0   :  { %v1217_v50 = vadd.f32 %v1215_v49, %v1207_v48  ;;  %v1421_v49 = vld [vmem:[#allocation3 + $0x14] sm:$0xf] }
0x1de2   :  { %1940 = vtanh.f32 %v1217_v50 }
0x1dec   :  { %v1941_v51 = vpop.eup %1940 }
0x1ded   :  { %1220 = vrot.lane.b32.xlu1 %v1941_v51, %s1988_s6 }
0x1e5f   :  { %v1221_v52 = vpop.permute.xlu1 %1220 }
0x1e60   :  { %v2415_v53 = vmul.f32 %v1221_v52, %v1206_v7 }
0x1e62   :  { %v1224_v4 = vpack.c.bf16 %v2415_v53, %v2415_v53 }
0x1e64   :  { %1226 = vrot.lane.b32.xlu0 %v1224_v4, %s1989_s7 }
0x1ed6   :  { %v1227_v55 = vpop.permute.xlu0 %1226 }
0x1ed7   :  { %1789 = vmatmul.mubr.msk.bf16.vlgmr.msra.gmra.mrb[28].mxu0 %vm213_vm6, %v1227_v55 }
0x1ed8   :  { %1380 = vmatpush1.bf16.msra.mxu0 %v2312_v20  ;;  %1411 = vmatprep.mubr.bf16.mxu0 %v1987_v6 }
0x1ed9   :  { %1381 = vmatprep.subr.bf16.mxu0 %v2321_v23 }
0x1edc   :  { %1382 = vmatpush1.bf16.msra.mxu0 %v2328_v24 }
0x1edd   :  { %1527 = vmatprep.subr.bf16.mxu0 %v2307_v19 }
0x1faa   :  { %v1265_v62 = vpop.f32.mrb[28].mxu0 }
0x1fab   :  { %v1267_v56 = vpop.f32.mrb[29].mxu0 }
0x1fac   :  { %v1272_v57 = vsel %vm21_vm2, %v1265_v62, %v1267_v56  ;;  %v1269_v59 = vpop.f32.mrb[30].mxu0 }
0x1fad   :  { %v1274_v60 = vadd.f32 %v1273_v58, %v1272_v57  ;;  %v1270_v61 = vpop.f32.mrb[31].mxu0 }
0x1faf   :  { %v1275_v63 = vmul.f32 0.5, %v1274_v60 }
0x1fb1   :  { %v1276_v1 = vsel %vm2086_vm5, %v1274_v60, %v1275_v63 }
0x1fb2   :  { %1942 = vtanh.f32 %v1276_v1 }
0x1fbc   :  { %v1943_v3 = vpop.eup %1942 }
0x1fbd   :  { %v1278_v31 = vmul.f32 0.5, %v1943_v3 }
0x1fbf   :  { %v1279_v54 = vadd.f32 0.5, %v1278_v31 }
0x1fc1   :  { %v1280_v19 = vsel %vm2086_vm5, %v1943_v3, %v1279_v54 }
0x1fc2   :  { %1283 = vrot.lane.b32.xlu1 %v1280_v19, %s1988_s6  ;;  %v1281_v10 = vmul.f32 %v1280_v19, %v1217_v50 }
0x2034   :  { %v1284_v8 = vpop.permute.xlu1 %1283 }
0x2035   :  { %v1286_v39 = vmul.f32 %v1284_v8, %v1280_v19  ;;  %v1495_v8 = vld [vmem:[#allocation3 + $0x18] sm:$0xf] }
0x2037   :  { %1288 = vrot.lane.b32.xlu0 %v1286_v39, %s1989_s7 }
0x20a9   :  { %v1289_v13 = vpop.permute.xlu0 %1288 }
0x20aa   :  { %v1291_v16 = vadd.f32 %v1289_v13, %v1281_v10 }
0x20ac   :  { %1944 = vtanh.f32 %v1291_v16 }
0x20b6   :  { %v1945_v17 = vpop.eup %1944 }
0x20b7   :  { %1294 = vrot.lane.b32.xlu1 %v1945_v17, %s1988_s6 }
0x2129   :  { %v1295_v18 = vpop.permute.xlu1 %1294 }
0x212a   :  { %v2435_v21 = vmul.f32 %v1295_v18, %v1280_v19 }
0x212c   :  { %v1298_v22 = vpack.c.bf16 %v2435_v21, %v2435_v21 }
0x212e   :  { %1300 = vrot.lane.b32.xlu0 %v1298_v22, %s1989_s7 }
0x21a0   :  { %v1301_v25 = vpop.permute.xlu0 %1300 }
0x21a1   :  { %1790 = vmatmul.mubr.msk.bf16.vlgmr.msra.gmra.mrb[24].mxu1 %vm213_vm6, %v1301_v25 }
0x21a2   :  { %1454 = vmatpush1.bf16.msra.mxu1 %v2312_v20  ;;  %1485 = vmatprep.mubr.bf16.mxu1 %v1987_v6 }
0x21a3   :  { %1455 = vmatprep.subr.bf16.mxu1 %v2321_v23 }
0x21a6   :  { %1456 = vmatpush1.bf16.msra.mxu1 %v2328_v24 }
0x2274   :  { %v1339_v26 = vpop.f32.mrb[24].mxu1 }
0x2275   :  { %v1341_v27 = vpop.f32.mrb[25].mxu1 }
0x2276   :  { %v1346_v28 = vsel %vm21_vm2, %v1339_v26, %v1341_v27  ;;  %v1343_v30 = vpop.f32.mrb[26].mxu1 }
0x2277   :  { %v1348_v32 = vadd.f32 %v1347_v29, %v1346_v28  ;;  %v1344_v47 = vpop.f32.mrb[27].mxu1 }
0x2279   :  { %v1349_v15 = vmul.f32 0.5, %v1348_v32 }
0x227b   :  { %v1350_v35 = vsel %vm2086_vm5, %v1348_v32, %v1349_v15 }
0x227c   :  { %1946 = vtanh.f32 %v1350_v35 }
0x2286   :  { %v1947_v36 = vpop.eup %1946 }
0x2287   :  { %v1352_v2 = vmul.f32 0.5, %v1947_v36 }
0x2289   :  { %v1353_v37 = vadd.f32 0.5, %v1352_v2 }
0x228b   :  { %v1354_v38 = vsel %vm2086_vm5, %v1947_v36, %v1353_v37 }
0x228c   :  { %1357 = vrot.lane.b32.xlu1 %v1354_v38, %s1988_s6  ;;  %v1355_v42 = vmul.f32 %v1354_v38, %v1291_v16 }
0x22fe   :  { %v1358_v40 = vpop.permute.xlu1 %1357 }
0x22ff   :  { %v1360_v41 = vmul.f32 %v1358_v40, %v1354_v38 }
0x2301   :  { %1362 = vrot.lane.b32.xlu0 %v1360_v41, %s1989_s7  ;;  %v1569_v41 = vld [vmem:[#allocation3 + $0x1c] sm:$0xf] }
0x2373   :  { %v1363_v43 = vpop.permute.xlu0 %1362 }
0x2374   :  { %v1365_v44 = vadd.f32 %v1363_v43, %v1355_v42 }
0x2376   :  { %1948 = vtanh.f32 %v1365_v44 }
0x2380   :  { %v1949_v5 = vpop.eup %1948 }
0x2381   :  { %1368 = vrot.lane.b32.xlu1 %v1949_v5, %s1988_s6 }
0x23f3   :  { %v1369_v45 = vpop.permute.xlu1 %1368 }
0x23f4   :  { %v2454_v46 = vmul.f32 %v1369_v45, %v1354_v38 }
0x23f6   :  { %v1372_v12 = vpack.c.bf16 %v2454_v46, %v2454_v46 }
0x23f8   :  { %1374 = vrot.lane.b32.xlu0 %v1372_v12, %s1989_s7 }
0x246a   :  { %v1375_v7 = vpop.permute.xlu0 %1374 }
0x246b   :  { %1791 = vmatmul.mubr.msk.bf16.vlgmr.msra.gmra.mrb[32].mxu0 %vm213_vm6, %v1375_v7 }
0x246c   :  { %1528 = vmatpush1.bf16.msra.mxu0 %v2312_v20  ;;  %1559 = vmatprep.mubr.bf16.mxu0 %v1987_v6 }
0x246d   :  { %1529 = vmatprep.subr.bf16.mxu0 %v2321_v23 }
0x2470   :  { %1530 = vmatpush1.bf16.msra.mxu0 %v2328_v24 }
0x253e   :  { %v1413_v14 = vpop.f32.mrb[32].mxu0 }
0x253f   :  { %v1415_v9 = vpop.f32.mrb[33].mxu0 }
0x2540   :  { %v1420_v48 = vsel %vm21_vm2, %v1413_v14, %v1415_v9  ;;  %v1417_v50 = vpop.f32.mrb[34].mxu0 }
0x2541   :  { %v1422_v51 = vadd.f32 %v1421_v49, %v1420_v48  ;;  %v1418_v52 = vpop.f32.mrb[35].mxu0  ;;  %v1631_v50 = vld [vmem:[%s2639_s3] sm:$0xff] }
0x2542   :  { %v1632_v52 = vld [vmem:[%s2639_s3 + $0x8] sm:$0xff] }
0x2543   :  { %v1423_v4 = vmul.f32 0.5, %v1422_v51 }
0x2545   :  { %v1424_v55 = vsel %vm2086_vm5, %v1422_v51, %v1423_v4  ;;  %v1650_v4 = vld [vmem:[%s2639_s3 + $0x98] sm:$0xff] }
0x2546   :  { %1950 = vtanh.f32 %v1424_v55  ;;  %v1848_v55 = vpack.c.bf16 %v1632_v52, %v1631_v50 }
0x2550   :  { %v1951_v20 = vpop.eup %1950 }
0x2551   :  { %v1426_v6 = vmul.f32 0.5, %v1951_v20 }
0x2553   :  { %v1427_v62 = vadd.f32 0.5, %v1426_v6  ;;  %v1633_v6 = vld [vmem:[%s2639_s3 + $0x10] sm:$0xff] }
0x2555   :  { %v1428_v23 = vsel %vm2086_vm5, %v1951_v20, %v1427_v62  ;;  %v1634_v62 = vld [vmem:[%s2639_s3 + $0x18] sm:$0xff] }
0x2556   :  { %1431 = vrot.lane.b32.xlu1 %v1428_v23, %s1988_s6  ;;  %v1429_v57 = vmul.f32 %v1428_v23, %v1365_v44 }
0x25c8   :  { %v1432_v24 = vpop.permute.xlu1 %1431 }
0x25c9   :  { %v1434_v56 = vmul.f32 %v1432_v24, %v1428_v23  ;;  %v1652_v24 = vld [vmem:[%s2639_s3 + $0xa8] sm:$0xff] }
0x25cb   :  { %1436 = vrot.lane.b32.xlu0 %v1434_v56, %s1989_s7  ;;  %v1852_v56 = vpack.c.bf16 %v1634_v62, %v1633_v6 }
0x263d   :  { %v1437_v58 = vpop.permute.xlu0 %1436 }
0x263e   :  { %v1439_v59 = vadd.f32 %v1437_v58, %v1429_v57  ;;  %v1635_v58 = vld [vmem:[%s2639_s3 + $0x20] sm:$0xff] }
0x2640   :  { %1952 = vtanh.f32 %v1439_v59 }
0x264a   :  { %v1953_v60 = vpop.eup %1952 }
0x264b   :  { %1442 = vrot.lane.b32.xlu1 %v1953_v60, %s1988_s6  ;;  %v1653_v60 = vld [vmem:[%s2639_s3 + $0xb0] sm:$0xff] }
0x26bd   :  { %v1443_v61 = vpop.permute.xlu1 %1442 }
0x26be   :  { %v1445_v63 = vmul.f32 %v1443_v61, %v1428_v23  ;;  %v1651_v23 = vld [vmem:[%s2639_s3 + $0xa0] sm:$0xff] }
0x26bf   :  { %v1854_v57 = vpack.c.bf16 %v1652_v24, %v1651_v23 }
0x26c0   :  { %v1446_v1 = vpack.c.bf16 %v1445_v63, %v1445_v63 }
0x26c2   :  { %1448 = vrot.lane.b32.xlu0 %v1446_v1, %s1989_s7  ;;  %v1637_v1 = vld [vmem:[%s2639_s3 + $0x30] sm:$0xff] }
0x2734   :  { %v1449_v3 = vpop.permute.xlu0 %1448 }
0x2735   :  { %1792 = vmatmul.mubr.msk.bf16.vlgmr.msra.gmra.mrb[28].mxu1 %vm213_vm6, %v1449_v3  ;;  %v1638_v3 = vld [vmem:[%s2639_s3 + $0x38] sm:$0xff] }
0x2808   :  { %v1487_v31 = vpop.f32.mrb[28].mxu1 }
0x2809   :  { %v1489_v54 = vpop.f32.mrb[29].mxu1 }
0x280a   :  { %v1494_v19 = vsel %vm21_vm2, %v1487_v31, %v1489_v54  ;;  %v1491_v39 = vpop.f32.mrb[30].mxu1  ;;  %v1860_v31 = vpack.c.bf16 %v1638_v3, %v1637_v1 }
0x280b   :  { %v1496_v10 = vadd.f32 %v1495_v8, %v1494_v19  ;;  %v1492_v13 = vpop.f32.mrb[31].mxu1  ;;  %v1655_v19 = vld [vmem:[%s2639_s3 + $0xc0] sm:$0xff]  ;;  %v1656_v8 = vld [vmem:[%s2639_s3 + $0xc8] sm:$0xff] }
0x280c   :  { %v1639_v13 = vld [vmem:[%s2639_s3 + $0x40] sm:$0xff] }
0x280d   :  { %v1497_v16 = vmul.f32 0.5, %v1496_v10 }
0x280f   :  { %v1498_v17 = vsel %vm2086_vm5, %v1496_v10, %v1497_v16  ;;  %v1862_v10 = vpack.c.bf16 %v1656_v8, %v1655_v19  ;;  %v1640_v16 = vld [vmem:[%s2639_s3 + $0x48] sm:$0xff] }
0x2810   :  { %1954 = vtanh.f32 %v1498_v17  ;;  %v1864_v17 = vpack.c.bf16 %v1640_v16, %v1639_v13 }
0x281a   :  { %v1955_v18 = vpop.eup %1954 }
0x281b   :  { %v1500_v22 = vmul.f32 0.5, %v1955_v18 }
0x281d   :  { %v1501_v25 = vadd.f32 0.5, %v1500_v22  ;;  %v1657_v22 = vld [vmem:[%s2639_s3 + $0xd0] sm:$0xff] }
0x281f   :  { %v1502_v26 = vsel %vm2086_vm5, %v1955_v18, %v1501_v25  ;;  %v1658_v25 = vld [vmem:[%s2639_s3 + $0xd8] sm:$0xff] }
0x2820   :  { %1505 = vrot.lane.b32.xlu1 %v1502_v26, %s1988_s6  ;;  %v1503_v29 = vmul.f32 %v1502_v26, %v1439_v59  ;;  %v1636_v59 = vld [vmem:[%s2639_s3 + $0x28] sm:$0xff] }
0x2821   :  { %v1856_v61 = vpack.c.bf16 %v1636_v59, %v1635_v58 }
0x2892   :  { %v1506_v27 = vpop.permute.xlu1 %1505 }
0x2893   :  { %v1508_v28 = vmul.f32 %v1506_v27, %v1502_v26  ;;  %v1866_v27 = vpack.c.bf16 %v1658_v25, %v1657_v22 }
0x2895   :  { %1510 = vrot.lane.b32.xlu0 %v1508_v28, %s1989_s7  ;;  %v1641_v28 = vld [vmem:[%s2639_s3 + $0x50] sm:$0xff] }
0x2907   :  { %v1511_v30 = vpop.permute.xlu0 %1510 }
0x2908   :  { %v2483_v32 = vadd.f32 %v1511_v30, %v1503_v29  ;;  %v1642_v29 = vld [vmem:[%s2639_s3 + $0x58] sm:$0xff] }
0x2909   :  { %v1868_v30 = vpack.c.bf16 %v1642_v29, %v1641_v28 }
0x290a   :  { %1956 = vtanh.f32 %v2483_v32 }
0x2914   :  { %v1957_v47 = vpop.eup %1956 }
0x2915   :  { %1516 = vrot.lane.b32.xlu1 %v1957_v47, %s1988_s6  ;;  %v1660_v47 = vld [vmem:[%s2639_s3 + $0xe8] sm:$0xff] }
0x2987   :  { %v1517_v15 = vpop.permute.xlu1 %1516 }
0x2988   :  { %v2487_v35 = vmul.f32 %v1517_v15, %v1502_v26  ;;  %v1643_v15 = vld [vmem:[%s2639_s3 + $0x60] sm:$0xff] }
0x298a   :  { %v1520_v36 = vpack.c.bf16 %v2487_v35, %v2487_v35 }
0x298c   :  { %1522 = vrot.lane.b32.xlu0 %v1520_v36, %s1989_s7 }
0x29fe   :  { %v1523_v2 = vpop.permute.xlu0 %1522 }
0x29ff   :  { %1793 = vmatmul.mubr.msk.bf16.vlgmr.msra.gmra.mrb[36].mxu0 %vm213_vm6, %v1523_v2  ;;  %v1644_v2 = vld [vmem:[%s2639_s3 + $0x68] sm:$0xff] }
0x2ad2   :  { %v1561_v37 = vpop.f32.mrb[36].mxu0 }
0x2ad3   :  { %v1563_v38 = vpop.f32.mrb[37].mxu0 }
0x2ad4   :  { %v1568_v40 = vsel %vm21_vm2, %v1561_v37, %v1563_v38  ;;  %v1565_v42 = vpop.f32.mrb[38].mxu0  ;;  %v1661_v37 = vld [vmem:[%s2639_s3 + $0xf0] sm:$0xff]  ;;  %v1662_v38 = vld [vmem:[%s2639_s3 + $0xf8] sm:$0xff] }
0x2ad5   :  { %v1570_v43 = vadd.f32 %v1569_v41, %v1568_v40  ;;  %v1566_v44 = vpop.f32.mrb[39].mxu0  ;;  %v1872_v41 = vpack.c.bf16 %v1644_v2, %v1643_v15  ;;  %v1874_v42 = vpack.c.bf16 %v1662_v38, %v1661_v37 }
0x2ad6   :  { %v1646_v44 = vld [vmem:[%s2639_s3 + $0x78] sm:$0xff] }
0x2ad7   :  { %v1571_v5 = vmul.f32 0.5, %v1570_v43 }
0x2ad9   :  { %v1572_v45 = vsel %vm2086_vm5, %v1570_v43, %v1571_v5  ;;  %v1645_v43 = vld [vmem:[%s2639_s3 + $0x70] sm:$0xff] }
0x2ada   :  { %1958 = vtanh.f32 %v1572_v45  ;;  %v1876_v45 = vpack.c.bf16 %v1646_v44, %v1645_v43 }
0x2ae4   :  { %v1959_v12 = vpop.eup %1958 }
0x2ae5   :  { %v1574_v7 = vmul.f32 0.5, %v1959_v12 }
0x2ae7   :  { %v1575_v14 = vadd.f32 0.5, %v1574_v7 }
0x2ae9   :  { %v2499_v9 = vsel %vm2086_vm5, %v1959_v12, %v1575_v14 }
0x2aea   :  { %1579 = vrot.lane.b32.xlu1 %v2499_v9, %s1988_s6  ;;  %v1577_v54 = vmul.f32 %v2499_v9, %v2483_v32  ;;  %v1659_v32 = vld [vmem:[%s2639_s3 + $0xe0] sm:$0xff] }
0x2aeb   :  { %v1870_v36 = vpack.c.bf16 %v1660_v47, %v1659_v32 }
0x2aee   :  { %1595 = vrot.lane.b32.xlu1 %v2375_v0, %s1989_s7  ;;  %v1648_v0 = vld [vmem:[%s2639_s3 + $0x88] sm:$0xff] }
0x2aef   :  { %v1846_v51 = vpack.c.bf16 %v1648_v0, %v1647_v33 }
0x2af1   :  { %1847 = vmatprep.subr.bf16.mxu1 %v1846_v51 }
0x2af2   :  { %1620 = vrot.lane.b32.xlu1 %v1445_v63, %s1988_s6  ;;  %1849 = vmatpush3.bf16.msra.mxu1 %v1848_v55 }
0x2b5c   :  { %v1580_v11 = vpop.permute.xlu1 %1579 }
0x2b5d   :  { %v1582_v48 = vmul.f32 %v1580_v11, %v2499_v9 }
0x2b5f   :  { %1584 = vrot.lane.b32.xlu0 %v1582_v48, %s1989_s7 }
0x2b60   :  { %v1596_v49 = vpop.permute.xlu1 %1595 }
0x2b61   :  { %1599 = vst.msk [vmem:[#allocation5] sm:$0xf] %vm1598_vm10, %v1596_v49 }
0x2b63   :  { %1615 = vrot.lane.b32.xlu0 %v2454_v46, %s1989_s7  ;;  %v1649_v46 = vld [vmem:[%s2639_s3 + $0x90] sm:$0xff]  ;;  %s1991_s7 = smov 112  }
0x2b64   :  { %v1850_v20 = vpack.c.bf16 %v1650_v4, %v1649_v46  ;;  %v1621_v26 = vpop.permute.xlu1 %1620 }
0x2b66   :  { %1851 = vmatprep.subr.bf16.mxu1 %v1850_v20 }
0x2b67   :  { %1601 = vrot.lane.b32.xlu0 %v2395_v34, %s1988_s6  ;;  %v1654_v34 = vld [vmem:[%s2639_s3 + $0xb8] sm:$0xff]  ;;  %1853 = vmatpush3.bf16.msra.mxu1 %v1852_v56 }
0x2b68   :  { %1855 = vmatprep.subr.bf16.mxu1 %v1854_v57  ;;  %v1858_v63 = vpack.c.bf16 %v1654_v34, %v1653_v60 }
0x2b6b   :  { %1607 = vrot.lane.b32.xlu0 %v2415_v53, %s1990_s1  ;;  %1857 = vmatpush3.bf16.msra.mxu1 %v1856_v61 }
0x2b6c   :  { %1859 = vmatprep.subr.bf16.mxu1 %v1858_v63 }
0x2b6f   :  { %1861 = vmatpush3.bf16.msra.mxu1 %v1860_v31 }
0x2b70   :  { %1863 = vmatprep.subr.bf16.mxu1 %v1862_v10 }
0x2b73   :  { %1865 = vmatpush3.bf16.msra.mxu1 %v1864_v17 }
0x2b74   :  { %1867 = vmatprep.subr.bf16.mxu1 %v1866_v27 }
0x2b77   :  { %1869 = vmatpush3.bf16.msra.mxu1 %v1868_v30 }
0x2b78   :  { %1871 = vmatprep.subr.bf16.mxu1 %v1870_v36 }
0x2b7b   :  { %1873 = vmatpush3.bf16.msra.mxu1 %v1872_v41 }
0x2b7c   :  { %1875 = vmatprep.subr.bf16.mxu1 %v1874_v42 }
0x2b7f   :  { %1877 = vmatpush3.bf16.msra.mxu1 %v1876_v45 }
0x2bd1   :  { %v1585_v53 = vpop.permute.xlu0 %1584 }
0x2bd2   :  { %v1587_v39 = vadd.f32 %v1585_v53, %v1577_v54 }
0x2bd4   :  { %1960 = vtanh.f32 %v1587_v39 }
0x2bd5   :  { %v1616_v18 = vpop.permute.xlu0 %1615 }
0x2bd6   :  { %1618 = vst.msk [vmem:[#allocation5 + $0x4] sm:$0xf] %vm1598_vm10, %v1616_v18 }
0x2bd7   :  { %1623 = vst.msk [vmem:[#allocation5 + $0x4] sm:$0xf] %vm1604_vm11, %v1621_v26 }
0x2bd9   :  { %v1602_v40 = vpop.permute.xlu0 %1601 }
0x2bda   :  { %1605 = vst.msk [vmem:[#allocation5] sm:$0xf] %vm1604_vm11, %v1602_v40 }
0x2bdd   :  { %v1608_v5 = vpop.permute.xlu0 %1607 }
0x2bde   :  { %v1961_v12 = vpop.eup %1960  ;;  %1611 = vst.msk [vmem:[#allocation5] sm:$0xf] %vm1610_vm12, %v1608_v5 }
0x2bdf   :  { %1613 = vst.msk [vmem:[#allocation5] sm:$0xf] %vm1612_vm13, %v2435_v21  ;;  %1590 = vrot.lane.b32.xlu1 %v1961_v12, %s1988_s6 }
0x2be3   :  { %1625 = vrot.lane.b32.xlu1 %v2487_v35, %s1990_s1  ;;  %v1794_v35 = vld [vmem:[%s2639_s3 + $0x100] ss:$0 sm:$0xff]  ;;  %s1992_s1 = smov [#allocation6]  }
0x2be4   :  { %s1756_s9 = sshll.u32 %s1992_s1, 4  ;;  %s1757_s9 = int_to_ptr.vmem [resolvable:$true] %s1756_s9 }
0x2be5   :  { %s1962_s10 = scalar_lea.vmem %s1757_s9, 32  ;;  %p1967_p1 = scmp.lt.s32.totalorder %s1757_s9, %s1757_s9 }
0x2be6   :  { %p1963_p0 = scmp.ne.s32.totalorder %s1757_s9, %s1962_s10  ;;  %p1968_p2 = scmp.lt.s32.totalorder %s1962_s10, %s1962_s10 }
0x2be8   :  { %p1969_p3 = por %p1968_p2, %p1967_p1 }
0x2bea   :  { %p1970_p4 = pnand %p1969_p3, %p1963_p0 }
0x2c51   :  { %v1591_v7 = vpop.permute.xlu1 %1590 }
0x2c52   :  { %v1593_v14 = vmul.f32 %v1591_v7, %v2499_v9 }
0x2c55   :  { %v1626_v11 = vpop.permute.xlu1 %1625 }
0x2c56   :  { %1628 = vst.msk [vmem:[#allocation5 + $0x4] sm:$0xf] %vm1610_vm12, %v1626_v11 }
0x2c57   :  { %1629 = vst.msk [vmem:[#allocation5 + $0x4] sm:$0xf] %vm1612_vm13, %v1593_v14 }
0x2c5e   :  { %v1630_v48 = vld [vmem:[#allocation5] sm:$0xff] }
0x2c5f   :  { %v1664_v49 = vcombine.high %v1630_v48, %v1630_v48 }
0x2c61   :  { %1730 = vmatprep.mubr.f32.mxu1 %v1664_v49 }
0x2c62   :  { %1731 = vmatmul.mubr.f32.vlgmr.msra.gmra.mrb[32].mxu1 %v1630_v48 }
0x2d35   :  { %v1827_v33 = vpop.f32.mrb[32].mxu1 }
0x2d36   :  { %v1828_v0 = vpop.f32.mrb[33].mxu1 }
0x2d37   :  { %v1829_v50 = vadd.f32 %v1828_v0, %v1827_v33 }
0x2d39   :  { %v1737_v21 = vrot.slane %v1829_v50, 2 }
0x2d3b   :  { %1738 = vrot.lane.b32.xlu0 %v1737_v21, %s1991_s7 }
0x2dad   :  { %v1739_v51 = vpop.permute.xlu0 %1738 }
0x2dae   :  { %v1741_v9 = vadd.f32 %v1829_v50, %v1739_v51 }
0x2db0   :  { %v1747_v52 = vadd.f32 %v1794_v35, %v1741_v9 }
0x2db2   :  { %1749 = vst.msk [vmem:[#allocation6] sm:$0x3] %vm1748_vm14, %v1747_v52 }
0x2db3   :  { %1973 = shalt.err (!%p1970_p4)
}
0x2db4   :  { %s1974_s13 = scalar_lea.hbm %s2640_s4, 32 }
0x2db5   :  { %p1975_p5 = scmp.ne.s32.totalorder %s2640_s4, %s1974_s13  ;;  %p1978_p6 = scmp.lt.u32.totalorder %s1974_s13, %s2640_s4 }
0x2db7   :  { %p1980_p7 = pnand %p1978_p6, %p1975_p5 }
0x2db9   :  { %1983 = shalt.err (!%p1980_p7)
}
0x2dba   :  { %1759 = dma.vmem_to_hbm [thread:$0]  %s1757_s9, 32, %s2640_s4, [#allocation7]  }
0x2dbb   :  { %1984 = dma.done.wait [#allocation7], 32  }
0x2dbc   :  { %1985 = vsyncadd [#allocation7], 4294967264 }
0x2dbd   :  { %1763 = vsyncpa [#allocation7], 1 }

</bundles_post_ra>
